<compile_context>
chip_gen: v7x
topology: tpu7x:2x2x1
jax: 0.10.0
libtpu: 0.0.40
codegen_flags: <defaults>
</compile_context>

<pallas_src>
import jax
import jax.numpy as jnp
from jax.experimental import pallas as pl
from jax.experimental.pallas import tpu as pltpu


def _make_kernel(Bb, Np, C, KLp, Hg, hd, G, eps=1e-5):
    BbN = Bb * Np
    BbKL = Bb * KLp
    Dg = Hg * hd

    def kernel(x_ref, kv_ref, m_ref, gam_ref, bet_ref,
               wq_ref, wkv_ref, wp_ref, bp_ref,
               o_ref, xn_s, kvn_s, oh_s):
        gi = pl.program_id(1)                       # head-group index (reduction axis)

        # ---- once per batch block: LayerNorm in f32, stash bf16 activations ----
        @pl.when(gi == 0)
        def _():
            gamma = gam_ref[...]                    # (1, C) f32
            beta = bet_ref[...]                     # (1, C) f32

            def layer_norm(t):                      # t: (rows, C) f32
                mu = jnp.mean(t, axis=-1, keepdims=True)
                var = jnp.mean(jnp.square(t - mu), axis=-1, keepdims=True)
                return (t - mu) * jax.lax.rsqrt(var + eps) * gamma + beta

            xn_s[...] = layer_norm(
                x_ref[...].reshape(BbN, C).astype(jnp.float32)).astype(jnp.bfloat16)
            kvn_s[...] = layer_norm(
                kv_ref[...].reshape(BbKL, C).astype(jnp.float32)).astype(jnp.bfloat16)

        xn = xn_s[...]                              # (Bb*Np,  C) bf16
        kvn = kvn_s[...]                            # (Bb*KLp, C) bf16

        # ---- grouped projections: wide MXU shapes (output width Dg / 2*Dg) ----
        q = jnp.dot(xn, wq_ref[...],
                    preferred_element_type=jnp.float32).astype(jnp.bfloat16)    # (BbN, Dg)
        kv2 = jnp.dot(kvn, wkv_ref[...],
                      preferred_element_type=jnp.float32).astype(jnp.bfloat16)  # (BbKL, 2*Dg)

        # ---- per-head attention inside this head group ----
        ohs = []
        for hi in range(Hg):                        # static, Hg is small
            lo = hi * hd
            qh = q[:, lo:lo + hd].reshape(Bb, Np, hd)
            kh = kv2[:, lo:lo + hd].reshape(Bb, KLp, hd)
            vh = kv2[:, Dg + lo:Dg + lo + hd].reshape(Bb, KLp, hd)
            mh = m_ref[:, pl.ds(hi, 1), :, :].reshape(Bb, Np, KLp).astype(jnp.float32)

            s = jnp.einsum("bnd,bkd->bnk", qh, kh,
                           preferred_element_type=jnp.float32)                  # (Bb, Np, KLp)
            s = s + mh
            s = s - jnp.max(s, axis=-1, keepdims=True)
            e = jnp.exp(s)
            # approx reciprocal: EUP path, eval-mode only (~1e-3 rel error).
            p = e * pl.reciprocal(jnp.sum(e, axis=-1, keepdims=True), approx=True)
            ohs.append(jnp.einsum("bnk,bkd->bnd", p.astype(jnp.bfloat16), vh,
                                  preferred_element_type=jnp.float32))          # (Bb, Np, hd)

        oh_grp = ohs[0] if Hg == 1 else jnp.concatenate(ohs, axis=-1)           # (Bb, Np, Dg)
        oh_s[gi] = oh_grp.reshape(BbN, Dg).astype(jnp.bfloat16)                 # one wide store

        # ---- last group: full output projection + bias + residual, one store ----
        @pl.when(gi == G - 1)
        def _():
            y = bp_ref[...]                                                      # (1, C) f32
            for gg in range(G):                      # contraction width Dg (>=128 when G>1)
                y = y + jnp.dot(oh_s[gg], wp_ref[gg],
                                preferred_element_type=jnp.float32)              # (BbN, C)
            o_ref[...] = x_ref[...] + y.reshape(Bb, Np, C)

    return kernel


def _vmem_capacity_bytes():
    try:
        cap = getattr(pltpu.get_tpu_info(), "vmem_capacity_bytes", None)
        if cap:
            return int(cap)
    except Exception:
        pass
    return 64 * 1024 * 1024          # conservative default (v7x per-TensorCore VMEM)


def _pick_head_group(H, hd, target=256):
    """Smallest divisor Hg of H with Hg*hd >= target and lane-aligned; else all heads."""
    for hg in range(1, H):
        if H % hg == 0 and hg * hd >= target and (hg * hd) % 128 == 0:
            return hg
    return H


def _pick_block_b(B, Np, C, KLp, Hg, budget_bytes):
    """Largest divisor of B whose per-step working set (incl. double buffers) fits."""
    per_b = (2 * 4 * Np * C            # x block (f32), double-buffered
             + 2 * 2 * KLp * C         # kv block (bf16), double-buffered
             + 2 * 2 * Hg * Np * KLp   # mask block (bf16, one head group), double-buffered
             + 2 * 4 * Np * C          # out block (f32), double-buffered
             + 2 * Np * C              # LayerNorm(x) scratch (bf16)
             + 2 * KLp * C             # LayerNorm(kv) scratch (bf16)
             + 2 * Np * C)             # attention-output scratch (bf16)
    bb = max(1, min(B, budget_bytes // max(per_b, 1)))
    if B >= 2:
        bb = min(bb, B // 2)           # keep >= 2 parallel batch blocks (both v7x TensorCores)
    while B % bb:
        bb -= 1
    return bb


def seq_att_block(x, key_value, attn_mask, params, num_heads, block_b=None, head_group=None):
    B, N, C = x.shape
    _, V, L, _ = key_value.shape
    H = num_heads
    assert C % H == 0, "dim must be divisible by num_heads"
    hd = C // H
    KL = V * L
    scale = hd ** -0.5

    # ---- host-side layout prep (free relative to the kernel) -----------------
    Np = -(-N // 8) * 8                # pad to the f32 sublane pack
    KLp = -(-KL // 8) * 8
    # TODO(synk): C is not padded to a 128 multiple (LayerNorm over C makes that invasive).

    kv_flat = key_value.reshape(B, KL, C)        # (V, L) -> KL flatten outside the kernel
    mask = attn_mask
    x_in = x
    if Np != N:
        x_in = jnp.pad(x_in, ((0, 0), (0, Np - N), (0, 0)))
        mask = jnp.pad(mask, ((0, 0), (0, 0), (0, Np - N), (0, 0)))
    if KLp != KL:
        kv_flat = jnp.pad(kv_flat, ((0, 0), (0, KLp - KL), (0, 0)))
        mask = jnp.pad(mask, ((0, 0), (0, 0), (0, 0), (0, KLp - KL)),
                       constant_values=-1e30)    # padded keys get ~-inf

    kv_bf16 = kv_flat.astype(jnp.bfloat16)       # halve the kv HBM stream (LN math stays f32)
    mask_bf16 = mask.astype(jnp.bfloat16)        # halve the largest HBM stream

    # Head grouping so projection matmuls have MXU-filling width.
    Hg = head_group if head_group is not None else _pick_head_group(H, hd)
    assert H % Hg == 0
    G = H // Hg
    Dg = Hg * hd

    gamma = params["gamma"].reshape(1, C).astype(jnp.float32)
    beta = params["beta"].reshape(1, C).astype(jnp.float32)
    bp = params["bp"].reshape(1, C).astype(jnp.float32)

    # Grouped weight layouts (group axis leading); attention scale folded into wq.
    wq_g = (params["wq"].T * scale).reshape(C, G, Dg).transpose(1, 0, 2).astype(jnp.bfloat16)
    wkv_t = params["wkv"].T                          # (C, 2C): [:, :C] = K part, [:, C:] = V part
    wk_g = wkv_t[:, :C].reshape(C, G, Dg).transpose(1, 0, 2)
    wv_g = wkv_t[:, C:].reshape(C, G, Dg).transpose(1, 0, 2)
    wkv_g = jnp.concatenate([wk_g, wv_g], axis=-1).astype(jnp.bfloat16)   # (G, C, 2*Dg)
    wp_g = params["wp"].T.reshape(G, Dg, C).astype(jnp.bfloat16)          # (G, Dg, C)

    # ---- VMEM budgeting (generation-aware) ------------------------------------
    vmem_cap = _vmem_capacity_bytes()                # 128 MiB v5e/v6e, 64 MiB v7x
    fixed = (2 * (2 * C * Dg + 2 * C * 2 * Dg + 2 * Dg * C * G)   # weights, double-buffered
             + 3 * 4 * C + (256 << 10))                           # biases + slack
    budget = max((vmem_cap * 3) // 8 - fixed, 1 << 20)
    if block_b is None:
        block_b = _pick_block_b(B, Np, C, KLp, Hg, budget)
    assert B % block_b == 0
    nB = B // block_b
    vmem_limit = max(32 << 20, min((vmem_cap * 3) // 4, 96 << 20))

    kernel = _make_kernel(block_b, Np, C, KLp, Hg, hd, G)

    cost = pl.CostEstimate(
        flops=int(2 * B * C * C * (2 * Np + 2 * KLp) + 4 * B * H * Np * KLp * hd),
        transcendentals=int(B * H * Np * KLp),
        bytes_accessed=int(4 * x_in.size + 2 * kv_bf16.size + 2 * mask_bf16.size
                           + 2 * (wq_g.size + wkv_g.size + wp_g.size)
                           + 4 * (gamma.size + beta.size + bp.size)
                           + 4 * B * Np * C),
    )

    grid_spec = pltpu.PrefetchScalarGridSpec(
        num_scalar_prefetch=0,
        grid=(nB, G),                                                     # head groups = reduction axis
        in_specs=[
            pl.BlockSpec((block_b, Np, C), lambda b, g: (b, 0, 0)),       # x (residual + LN input)
            pl.BlockSpec((block_b, KLp, C), lambda b, g: (b, 0, 0)),      # key_value (bf16, flattened)
            pl.BlockSpec((block_b, Hg, Np, KLp), lambda b, g: (b, g, 0, 0)),  # mask, one group / step
            pl.BlockSpec((1, C), lambda b, g: (0, 0)),                    # gamma
            pl.BlockSpec((1, C), lambda b, g: (0, 0)),                    # beta
            pl.BlockSpec((None, C, Dg), lambda b, g: (g, 0, 0)),          # wq (per group, scale folded)
            pl.BlockSpec((None, C, 2 * Dg), lambda b, g: (g, 0, 0)),      # fused wk|wv (per group)
            pl.BlockSpec((G, Dg, C), lambda b, g: (0, 0, 0)),             # wp (full output projection)
            pl.BlockSpec((1, C), lambda b, g: (0, 0)),                    # proj bias
        ],
        out_specs=pl.BlockSpec((block_b, Np, C), lambda b, g: (b, 0, 0)),
        scratch_shapes=[
            pltpu.VMEM((block_b * Np, C), jnp.bfloat16),     # LayerNorm(x) activations
            pltpu.VMEM((block_b * KLp, C), jnp.bfloat16),    # LayerNorm(kv) activations
            pltpu.VMEM((G, block_b * Np, Dg), jnp.bfloat16), # attention outputs (pre-projection)
        ],
    )

    out = pl.pallas_call(
        kernel,
        out_shape=jax.ShapeDtypeStruct((B, Np, C), jnp.float32),
        grid_spec=grid_spec,
        compiler_params=pltpu.CompilerParams(
            dimension_semantics=("parallel", "arbitrary"),
            vmem_limit_bytes=int(vmem_limit),
        ),
        cost_estimate=cost,
    )(x_in, kv_bf16, mask_bf16, gamma, beta, wq_g, wkv_g, wp_g, bp)

    return out[:, :N, :] if Np != N else out


def seq_att_block_reference(x, key_value, attn_mask, params, num_heads):
    """Pure-JAX f32 reference mirroring the PyTorch forward (eval mode)."""
    B, N, C = x.shape
    _, V, L, _ = key_value.shape
    H = num_heads
    hd = C // H
    KL = V * L

    def ln(t):
        mu = t.mean(-1, keepdims=True)
        var = ((t - mu) ** 2).mean(-1, keepdims=True)
        return (t - mu) / jnp.sqrt(var + 1e-5) * params["gamma"] + params["beta"]

    xn = ln(x)
    kvn = ln(key_value).reshape(B, KL, C)
    q = xn @ params["wq"].T                                 # (B, N, C)
    kvp = kvn @ params["wkv"].T                             # (B, KL, 2C)
    k, v = kvp[..., :C], kvp[..., C:]
    qh = q.reshape(B, N, H, hd).transpose(0, 2, 1, 3)       # (B, H, N, hd)
    kh = k.reshape(B, KL, H, hd).transpose(0, 2, 1, 3)      # (B, H, KL, hd)
    vh = v.reshape(B, KL, H, hd).transpose(0, 2, 1, 3)
    s = jnp.einsum("bhnd,bhkd->bhnk", qh, kh) * hd ** -0.5 + attn_mask
    p = jax.nn.softmax(s, axis=-1)
    o = jnp.einsum("bhnk,bhkd->bhnd", p, vh).transpose(0, 2, 1, 3).reshape(B, N, C)
    y = o @ params["wp"].T + params["bp"]
    return x + y


if __name__ == "__main__":
    B, N, C = 2, 8, 32
    V, L = 2, 8
    H = 4
    KL = V * L

    key = jax.random.PRNGKey(0)
    k_x, k_kv, k_m, k_wq, k_wkv, k_wp, k_g, k_b, k_bp = jax.random.split(key, 9)

    x = jax.random.normal(k_x, (B, N, C), dtype=jnp.float32)
    key_value = jax.random.normal(k_kv, (B, V, L, C), dtype=jnp.float32)
    attn_mask = 0.5 * jax.random.normal(k_m, (B, H, N, KL), dtype=jnp.float32)

    params = {
        "gamma": 1.0 + 0.1 * jax.random.normal(k_g, (C,), dtype=jnp.float32),   # norm1.weight
        "beta": 0.1 * jax.random.normal(k_b, (C,), dtype=jnp.float32),          # norm1.bias
        "wq": 0.05 * jax.random.normal(k_wq, (C, C), dtype=jnp.float32),        # q_proj.weight
        "wkv": 0.05 * jax.random.normal(k_wkv, (2 * C, C), dtype=jnp.float32),  # kv_proj.weight
        "wp": 0.05 * jax.random.normal(k_wp, (C, C), dtype=jnp.float32),        # attn.proj.weight
        "bp": 0.05 * jax.random.normal(k_bp, (C,), dtype=jnp.float32),          # attn.proj.bias
    }

    out = seq_att_block(x, key_value, attn_mask, params, num_heads=H)
    out = jax.block_until_ready(out)

    ref = seq_att_block_reference(x, key_value, attn_mask, params, num_heads=H)
    assert out.shape == (B, N, C)
    # bf16 matmul operands + bf16 kv stream (f32 accumulation / LayerNorm) -> loose tolerance.
    assert bool(jnp.allclose(out, ref, atol=3e-2, rtol=3e-2)), "mismatch vs reference"

    print("KERNEL_OK")
</pallas_src>

<mosaic_0001>
module attributes {stable_mosaic.version = 11 : i64} {
  func.func @kernel(%arg0: i32, %arg1: i32, %arg2: memref<1x8x32xf32, #tpu.memory_space<vmem>>, %arg3: memref<1x16x32xbf16, #tpu.memory_space<vmem>>, %arg4: memref<1x4x8x16xbf16, #tpu.memory_space<vmem>>, %arg5: memref<1x32xf32, #tpu.memory_space<vmem>>, %arg6: memref<1x32xf32, #tpu.memory_space<vmem>>, %arg7: memref<1x32x32xbf16, #tpu.memory_space<vmem>>, %arg8: memref<1x32x64xbf16, #tpu.memory_space<vmem>>, %arg9: memref<1x32x32xbf16, #tpu.memory_space<vmem>>, %arg10: memref<1x32xf32, #tpu.memory_space<vmem>>, %arg11: memref<1x8x32xf32, #tpu.memory_space<vmem>>, %arg12: memref<8x32xbf16, #tpu.memory_space<vmem>>, %arg13: memref<16x32xbf16, #tpu.memory_space<vmem>>, %arg14: memref<1x8x32xbf16, #tpu.memory_space<vmem>>) attributes {dimension_semantics = [#tpu.dimension_semantics<parallel>, #tpu.dimension_semantics<arbitrary>], iteration_bounds = array<i64: 2, 1>, scalar_prefetch = 0 : i64, scratch_operands = 3 : i64, tpu.core_type = #tpu.core_type<tc>, window_params = [{transform_indices = @transform_0, window_bounds = array<i64: 1, 8, 32>}, {transform_indices = @transform_1, window_bounds = array<i64: 1, 16, 32>}, {transform_indices = @transform_2, window_bounds = array<i64: 1, 4, 8, 16>}, {pipeline_mode = #tpu.pipeline_mode<synchronous>, transform_indices = @transform_3, window_bounds = array<i64: 1, 32>}, {pipeline_mode = #tpu.pipeline_mode<synchronous>, transform_indices = @transform_4, window_bounds = array<i64: 1, 32>}, {transform_indices = @transform_5, window_bounds = array<i64: 1, 32, 32>}, {transform_indices = @transform_6, window_bounds = array<i64: 1, 32, 64>}, {pipeline_mode = #tpu.pipeline_mode<synchronous>, transform_indices = @transform_7, window_bounds = array<i64: 1, 32, 32>}, {pipeline_mode = #tpu.pipeline_mode<synchronous>, transform_indices = @transform_8, window_bounds = array<i64: 1, 32>}, {transform_indices = @transform_9, window_bounds = array<i64: 1, 8, 32>}]} {
    %c0_i32 = arith.constant 0 : i32
    %0 = arith.cmpi eq, %arg1, %c0_i32 : i32
    %1 = arith.extui %0 : i1 to i32
    %c0_i32_0 = arith.constant 0 : i32
    %2 = arith.cmpi ne, %1, %c0_i32_0 : i32
    scf.if %2 {
      %c0_44 = arith.constant 0 : index
      %c0_45 = arith.constant 0 : index
      %115 = vector.load %arg5[%c0_44, %c0_45] : memref<1x32xf32, #tpu.memory_space<vmem>>, vector<1x32xf32>
      %c0_46 = arith.constant 0 : index
      %c0_47 = arith.constant 0 : index
      %116 = vector.load %arg6[%c0_46, %c0_47] : memref<1x32xf32, #tpu.memory_space<vmem>>, vector<1x32xf32>
      %c0_48 = arith.constant 0 : index
      %c0_49 = arith.constant 0 : index
      %c0_50 = arith.constant 0 : index
      %117 = vector.load %arg2[%c0_48, %c0_49, %c0_50] : memref<1x8x32xf32, #tpu.memory_space<vmem>>, vector<1x8x32xf32>
      %118 = vector.shape_cast %117 : vector<1x8x32xf32> to vector<8x32xf32>
      %cst_51 = arith.constant dense<0.000000e+00> : vector<8xf32>
      %119 = vector.multi_reduction <add>, %118, %cst_51 [1] : vector<8x32xf32> to vector<8xf32>
      %120 = vector.shape_cast %119 : vector<8xf32> to vector<8x1xf32>
      %cst_52 = arith.constant 3.200000e+01 : f32
      %121 = vector.broadcast %cst_52 : f32 to vector<8x1xf32>
      %122 = arith.divf %120, %121 : vector<8x1xf32>
      %123 = vector.broadcast %122 : vector<8x1xf32> to vector<8x32xf32>
      %124 = arith.subf %118, %123 : vector<8x32xf32>
      %125 = arith.mulf %124, %124 : vector<8x32xf32>
      %cst_53 = arith.constant dense<0.000000e+00> : vector<8xf32>
      %126 = vector.multi_reduction <add>, %125, %cst_53 [1] : vector<8x32xf32> to vector<8xf32>
      %127 = vector.shape_cast %126 : vector<8xf32> to vector<8x1xf32>
      %cst_54 = arith.constant 3.200000e+01 : f32
      %128 = vector.broadcast %cst_54 : f32 to vector<8x1xf32>
      %129 = arith.divf %127, %128 : vector<8x1xf32>
      %130 = vector.broadcast %122 : vector<8x1xf32> to vector<8x32xf32>
      %131 = arith.subf %118, %130 : vector<8x32xf32>
      %cst_55 = arith.constant 9.99999974E-6 : f32
      %132 = vector.broadcast %cst_55 : f32 to vector<8x1xf32>
      %133 = arith.addf %129, %132 : vector<8x1xf32>
      %134 = math.rsqrt %133 : vector<8x1xf32>
      %135 = vector.broadcast %134 : vector<8x1xf32> to vector<8x32xf32>
      %136 = arith.mulf %131, %135 : vector<8x32xf32>
      %137 = vector.broadcast %115 : vector<1x32xf32> to vector<8x32xf32>
      %138 = arith.mulf %136, %137 : vector<8x32xf32>
      %139 = vector.broadcast %116 : vector<1x32xf32> to vector<8x32xf32>
      %140 = arith.addf %138, %139 : vector<8x32xf32>
      %141 = arith.truncf %140 : vector<8x32xf32> to vector<8x32xbf16>
      %c0_56 = arith.constant 0 : index
      %c0_57 = arith.constant 0 : index
      %142 = vector.load %arg12[%c0_56, %c0_57] : memref<8x32xbf16, #tpu.memory_space<vmem>>, vector<8x32xbf16>
      tpu.vector_store %arg12[%c0_56, %c0_57], %141 {strides = array<i32>} : memref<8x32xbf16, #tpu.memory_space<vmem>>, vector<8x32xbf16>,
      %c0_58 = arith.constant 0 : index
      %c0_59 = arith.constant 0 : index
      %c0_60 = arith.constant 0 : index
      %143 = vector.load %arg3[%c0_58, %c0_59, %c0_60] : memref<1x16x32xbf16, #tpu.memory_space<vmem>>, vector<1x16x32xbf16>
      %144 = vector.shape_cast %143 : vector<1x16x32xbf16> to vector<16x32xbf16>
      %145 = arith.extf %144 : vector<16x32xbf16> to vector<16x32xf32>
      %cst_61 = arith.constant dense<0.000000e+00> : vector<16xf32>
      %146 = vector.multi_reduction <add>, %145, %cst_61 [1] : vector<16x32xf32> to vector<16xf32>
      %147 = vector.shape_cast %146 : vector<16xf32> to vector<16x1xf32>
      %cst_62 = arith.constant 3.200000e+01 : f32
      %148 = vector.broadcast %cst_62 : f32 to vector<16x1xf32>
      %149 = arith.divf %147, %148 : vector<16x1xf32>
      %150 = vector.broadcast %149 : vector<16x1xf32> to vector<16x32xf32>
      %151 = arith.subf %145, %150 : vector<16x32xf32>
      %152 = arith.mulf %151, %151 : vector<16x32xf32>
      %cst_63 = arith.constant dense<0.000000e+00> : vector<16xf32>
      %153 = vector.multi_reduction <add>, %152, %cst_63 [1] : vector<16x32xf32> to vector<16xf32>
      %154 = vector.shape_cast %153 : vector<16xf32> to vector<16x1xf32>
      %cst_64 = arith.constant 3.200000e+01 : f32
      %155 = vector.broadcast %cst_64 : f32 to vector<16x1xf32>
      %156 = arith.divf %154, %155 : vector<16x1xf32>
      %157 = vector.broadcast %149 : vector<16x1xf32> to vector<16x32xf32>
      %158 = arith.subf %145, %157 : vector<16x32xf32>
      %cst_65 = arith.constant 9.99999974E-6 : f32
      %159 = vector.broadcast %cst_65 : f32 to vector<16x1xf32>
      %160 = arith.addf %156, %159 : vector<16x1xf32>
      %161 = math.rsqrt %160 : vector<16x1xf32>
      %162 = vector.broadcast %161 : vector<16x1xf32> to vector<16x32xf32>
      %163 = arith.mulf %158, %162 : vector<16x32xf32>
      %164 = vector.broadcast %115 : vector<1x32xf32> to vector<16x32xf32>
      %165 = arith.mulf %163, %164 : vector<16x32xf32>
      %166 = vector.broadcast %116 : vector<1x32xf32> to vector<16x32xf32>
      %167 = arith.addf %165, %166 : vector<16x32xf32>
      %168 = arith.truncf %167 : vector<16x32xf32> to vector<16x32xbf16>
      %c0_66 = arith.constant 0 : index
      %c0_67 = arith.constant 0 : index
      %169 = vector.load %arg13[%c0_66, %c0_67] : memref<16x32xbf16, #tpu.memory_space<vmem>>, vector<16x32xbf16>
      tpu.vector_store %arg13[%c0_66, %c0_67], %168 {strides = array<i32>} : memref<16x32xbf16, #tpu.memory_space<vmem>>, vector<16x32xbf16>,
    } else {
    }
    %c0 = arith.constant 0 : index
    %c0_1 = arith.constant 0 : index
    %3 = vector.load %arg12[%c0, %c0_1] : memref<8x32xbf16, #tpu.memory_space<vmem>>, vector<8x32xbf16>
    %c0_2 = arith.constant 0 : index
    %c0_3 = arith.constant 0 : index
    %4 = vector.load %arg13[%c0_2, %c0_3] : memref<16x32xbf16, #tpu.memory_space<vmem>>, vector<16x32xbf16>
    %c0_4 = arith.constant 0 : index
    %c0_5 = arith.constant 0 : index
    %c0_6 = arith.constant 0 : index
    %5 = vector.load %arg7[%c0_4, %c0_5, %c0_6] : memref<1x32x32xbf16, #tpu.memory_space<vmem>>, vector<1x32x32xbf16>
    %6 = vector.shape_cast %5 : vector<1x32x32xbf16> to vector<32x32xbf16>
    %cst = arith.constant dense<0.000000e+00> : vector<8x32xf32>
    %7 = tpu.matmul %3, %6, %cst {dimension_numbers = #tpu.dot_dimension_numbers<[1], [0], [0], [1], [0, 0, 1, 1], [], []>} : vector<8x32xbf16>, vector<32x32xbf16>, vector<8x32xf32> -> vector<8x32xf32>
    %8 = arith.truncf %7 : vector<8x32xf32> to vector<8x32xbf16>
    %c0_7 = arith.constant 0 : index
    %c0_8 = arith.constant 0 : index
    %c0_9 = arith.constant 0 : index
    %9 = vector.load %arg8[%c0_7, %c0_8, %c0_9] : memref<1x32x64xbf16, #tpu.memory_space<vmem>>, vector<1x32x64xbf16>
    %10 = vector.shape_cast %9 : vector<1x32x64xbf16> to vector<32x64xbf16>
    %cst_10 = arith.constant dense<0.000000e+00> : vector<16x64xf32>
    %11 = tpu.matmul %4, %10, %cst_10 {dimension_numbers = #tpu.dot_dimension_numbers<[1], [0], [0], [1], [0, 0, 1, 1], [], []>} : vector<16x32xbf16>, vector<32x64xbf16>, vector<16x64xf32> -> vector<16x64xf32>
    %12 = arith.truncf %11 : vector<16x64xf32> to vector<16x64xbf16>
    %13 = vector.extract_strided_slice %8 {offsets = [0, 0], sizes = [8, 8], strides = [1, 1]} : vector<8x32xbf16> to vector<8x8xbf16>
    %14 = vector.shape_cast %13 : vector<8x8xbf16> to vector<1x8x8xbf16>
    %15 = vector.extract_strided_slice %12 {offsets = [0, 0], sizes = [16, 8], strides = [1, 1]} : vector<16x64xbf16> to vector<16x8xbf16>
    %16 = vector.shape_cast %15 : vector<16x8xbf16> to vector<1x16x8xbf16>
    %17 = vector.extract_strided_slice %12 {offsets = [0, 32], sizes = [16, 8], strides = [1, 1]} : vector<16x64xbf16> to vector<16x8xbf16>
    %18 = vector.shape_cast %17 : vector<16x8xbf16> to vector<1x16x8xbf16>
    %c0_11 = arith.constant 0 : index
    %c0_12 = arith.constant 0 : index
    %c0_13 = arith.constant 0 : index
    %c0_14 = arith.constant 0 : index
    %19 = vector.load %arg4[%c0_11, %c0_12, %c0_13, %c0_14] : memref<1x4x8x16xbf16, #tpu.memory_space<vmem>>, vector<1x1x8x16xbf16>
    %20 = vector.shape_cast %19 : vector<1x1x8x16xbf16> to vector<1x8x16xbf16>
    %21 = arith.extf %20 : vector<1x8x16xbf16> to vector<1x8x16xf32>
    "tpu.trace_start"() <{level = 10 : i32, message = "bnd,bkd->bnk"}> : () -> ()
    %cst_15 = arith.constant dense<0.000000e+00> : vector<1x8x16xf32>
    %22 = tpu.matmul %14, %16, %cst_15 {dimension_numbers = #tpu.dot_dimension_numbers<[2], [2], [1], [1], [0, 0, 0, 1, 1, 1], [0], [0]>} : vector<1x8x8xbf16>, vector<1x16x8xbf16>, vector<1x8x16xf32> -> vector<1x8x16xf32>
    "tpu.trace_stop"() : () -> ()
    %23 = arith.addf %22, %21 : vector<1x8x16xf32>
    %cst_16 = arith.constant dense<0xFF800000> : vector<1x8xf32>
    %24 = vector.multi_reduction <maximumf>, %23, %cst_16 [2] : vector<1x8x16xf32> to vector<1x8xf32>
    %25 = vector.shape_cast %24 : vector<1x8xf32> to vector<1x8x1xf32>
    %26 = vector.broadcast %25 : vector<1x8x1xf32> to vector<1x8x16xf32>
    %27 = arith.subf %23, %26 : vector<1x8x16xf32>
    %28 = math.exp %27 : vector<1x8x16xf32>
    %cst_17 = arith.constant dense<0.000000e+00> : vector<1x8xf32>
    %29 = vector.multi_reduction <add>, %28, %cst_17 [2] : vector<1x8x16xf32> to vector<1x8xf32>
    %30 = vector.shape_cast %29 : vector<1x8xf32> to vector<1x8x1xf32>
    %31 = tpu.reciprocal %30 {approx = true} : vector<1x8x1xf32> -> vector<1x8x1xf32>
    %32 = vector.broadcast %31 : vector<1x8x1xf32> to vector<1x8x16xf32>
    %33 = arith.mulf %28, %32 : vector<1x8x16xf32>
    %34 = arith.truncf %33 : vector<1x8x16xf32> to vector<1x8x16xbf16>
    "tpu.trace_start"() <{level = 10 : i32, message = "bnk,bkd->bnd"}> : () -> ()
    %cst_18 = arith.constant dense<0.000000e+00> : vector<1x8x8xf32>
    %35 = tpu.matmul %34, %18, %cst_18 {dimension_numbers = #tpu.dot_dimension_numbers<[2], [1], [1], [2], [0, 0, 0, 1, 1, 2], [0], [0]>} : vector<1x8x16xbf16>, vector<1x16x8xbf16>, vector<1x8x8xf32> -> vector<1x8x8xf32>
    "tpu.trace_stop"() : () -> ()
    %36 = vector.extract_strided_slice %8 {offsets = [0, 8], sizes = [8, 8], strides = [1, 1]} : vector<8x32xbf16> to vector<8x8xbf16>
    %37 = vector.shape_cast %36 : vector<8x8xbf16> to vector<1x8x8xbf16>
    %38 = vector.extract_strided_slice %12 {offsets = [0, 8], sizes = [16, 8], strides = [1, 1]} : vector<16x64xbf16> to vector<16x8xbf16>
    %39 = vector.shape_cast %38 : vector<16x8xbf16> to vector<1x16x8xbf16>
    %40 = vector.extract_strided_slice %12 {offsets = [0, 40], sizes = [16, 8], strides = [1, 1]} : vector<16x64xbf16> to vector<16x8xbf16>
    %41 = vector.shape_cast %40 : vector<16x8xbf16> to vector<1x16x8xbf16>
    %c0_19 = arith.constant 0 : index
    %c1 = arith.constant 1 : index
    %c0_20 = arith.constant 0 : index
    %c0_21 = arith.constant 0 : index
    %42 = vector.load %arg4[%c0_19, %c1, %c0_20, %c0_21] : memref<1x4x8x16xbf16, #tpu.memory_space<vmem>>, vector<1x1x8x16xbf16>
    %43 = vector.shape_cast %42 : vector<1x1x8x16xbf16> to vector<1x8x16xbf16>
    %44 = arith.extf %43 : vector<1x8x16xbf16> to vector<1x8x16xf32>
    "tpu.trace_start"() <{level = 10 : i32, message = "bnd,bkd->bnk"}> : () -> ()
    %cst_22 = arith.constant dense<0.000000e+00> : vector<1x8x16xf32>
    %45 = tpu.matmul %37, %39, %cst_22 {dimension_numbers = #tpu.dot_dimension_numbers<[2], [2], [1], [1], [0, 0, 0, 1, 1, 1], [0], [0]>} : vector<1x8x8xbf16>, vector<1x16x8xbf16>, vector<1x8x16xf32> -> vector<1x8x16xf32>
    "tpu.trace_stop"() : () -> ()
    %46 = arith.addf %45, %44 : vector<1x8x16xf32>
    %cst_23 = arith.constant dense<0xFF800000> : vector<1x8xf32>
    %47 = vector.multi_reduction <maximumf>, %46, %cst_23 [2] : vector<1x8x16xf32> to vector<1x8xf32>
    %48 = vector.shape_cast %47 : vector<1x8xf32> to vector<1x8x1xf32>
    %49 = vector.broadcast %48 : vector<1x8x1xf32> to vector<1x8x16xf32>
    %50 = arith.subf %46, %49 : vector<1x8x16xf32>
    %51 = math.exp %50 : vector<1x8x16xf32>
    %cst_24 = arith.constant dense<0.000000e+00> : vector<1x8xf32>
    %52 = vector.multi_reduction <add>, %51, %cst_24 [2] : vector<1x8x16xf32> to vector<1x8xf32>
    %53 = vector.shape_cast %52 : vector<1x8xf32> to vector<1x8x1xf32>
    %54 = tpu.reciprocal %53 {approx = true} : vector<1x8x1xf32> -> vector<1x8x1xf32>
    %55 = vector.broadcast %54 : vector<1x8x1xf32> to vector<1x8x16xf32>
    %56 = arith.mulf %51, %55 : vector<1x8x16xf32>
    %57 = arith.truncf %56 : vector<1x8x16xf32> to vector<1x8x16xbf16>
    "tpu.trace_start"() <{level = 10 : i32, message = "bnk,bkd->bnd"}> : () -> ()
    %cst_25 = arith.constant dense<0.000000e+00> : vector<1x8x8xf32>
    %58 = tpu.matmul %57, %41, %cst_25 {dimension_numbers = #tpu.dot_dimension_numbers<[2], [1], [1], [2], [0, 0, 0, 1, 1, 2], [0], [0]>} : vector<1x8x16xbf16>, vector<1x16x8xbf16>, vector<1x8x8xf32> -> vector<1x8x8xf32>
    "tpu.trace_stop"() : () -> ()
    %59 = vector.extract_strided_slice %8 {offsets = [0, 16], sizes = [8, 8], strides = [1, 1]} : vector<8x32xbf16> to vector<8x8xbf16>
    %60 = vector.shape_cast %59 : vector<8x8xbf16> to vector<1x8x8xbf16>
    %61 = vector.extract_strided_slice %12 {offsets = [0, 16], sizes = [16, 8], strides = [1, 1]} : vector<16x64xbf16> to vector<16x8xbf16>
    %62 = vector.shape_cast %61 : vector<16x8xbf16> to vector<1x16x8xbf16>
    %63 = vector.extract_strided_slice %12 {offsets = [0, 48], sizes = [16, 8], strides = [1, 1]} : vector<16x64xbf16> to vector<16x8xbf16>
    %64 = vector.shape_cast %63 : vector<16x8xbf16> to vector<1x16x8xbf16>
    %c0_26 = arith.constant 0 : index
    %c2 = arith.constant 2 : index
    %c0_27 = arith.constant 0 : index
    %c0_28 = arith.constant 0 : index
    %65 = vector.load %arg4[%c0_26, %c2, %c0_27, %c0_28] : memref<1x4x8x16xbf16, #tpu.memory_space<vmem>>, vector<1x1x8x16xbf16>
    %66 = vector.shape_cast %65 : vector<1x1x8x16xbf16> to vector<1x8x16xbf16>
    %67 = arith.extf %66 : vector<1x8x16xbf16> to vector<1x8x16xf32>
    "tpu.trace_start"() <{level = 10 : i32, message = "bnd,bkd->bnk"}> : () -> ()
    %cst_29 = arith.constant dense<0.000000e+00> : vector<1x8x16xf32>
    %68 = tpu.matmul %60, %62, %cst_29 {dimension_numbers = #tpu.dot_dimension_numbers<[2], [2], [1], [1], [0, 0, 0, 1, 1, 1], [0], [0]>} : vector<1x8x8xbf16>, vector<1x16x8xbf16>, vector<1x8x16xf32> -> vector<1x8x16xf32>
    "tpu.trace_stop"() : () -> ()
    %69 = arith.addf %68, %67 : vector<1x8x16xf32>
    %cst_30 = arith.constant dense<0xFF800000> : vector<1x8xf32>
    %70 = vector.multi_reduction <maximumf>, %69, %cst_30 [2] : vector<1x8x16xf32> to vector<1x8xf32>
    %71 = vector.shape_cast %70 : vector<1x8xf32> to vector<1x8x1xf32>
    %72 = vector.broadcast %71 : vector<1x8x1xf32> to vector<1x8x16xf32>
    %73 = arith.subf %69, %72 : vector<1x8x16xf32>
    %74 = math.exp %73 : vector<1x8x16xf32>
    %cst_31 = arith.constant dense<0.000000e+00> : vector<1x8xf32>
    %75 = vector.multi_reduction <add>, %74, %cst_31 [2] : vector<1x8x16xf32> to vector<1x8xf32>
    %76 = vector.shape_cast %75 : vector<1x8xf32> to vector<1x8x1xf32>
    %77 = tpu.reciprocal %76 {approx = true} : vector<1x8x1xf32> -> vector<1x8x1xf32>
    %78 = vector.broadcast %77 : vector<1x8x1xf32> to vector<1x8x16xf32>
    %79 = arith.mulf %74, %78 : vector<1x8x16xf32>
    %80 = arith.truncf %79 : vector<1x8x16xf32> to vector<1x8x16xbf16>
    "tpu.trace_start"() <{level = 10 : i32, message = "bnk,bkd->bnd"}> : () -> ()
    %cst_32 = arith.constant dense<0.000000e+00> : vector<1x8x8xf32>
    %81 = tpu.matmul %80, %64, %cst_32 {dimension_numbers = #tpu.dot_dimension_numbers<[2], [1], [1], [2], [0, 0, 0, 1, 1, 2], [0], [0]>} : vector<1x8x16xbf16>, vector<1x16x8xbf16>, vector<1x8x8xf32> -> vector<1x8x8xf32>
    "tpu.trace_stop"() : () -> ()
    %82 = vector.extract_strided_slice %8 {offsets = [0, 24], sizes = [8, 8], strides = [1, 1]} : vector<8x32xbf16> to vector<8x8xbf16>
    %83 = vector.shape_cast %82 : vector<8x8xbf16> to vector<1x8x8xbf16>
    %84 = vector.extract_strided_slice %12 {offsets = [0, 24], sizes = [16, 8], strides = [1, 1]} : vector<16x64xbf16> to vector<16x8xbf16>
    %85 = vector.shape_cast %84 : vector<16x8xbf16> to vector<1x16x8xbf16>
    %86 = vector.extract_strided_slice %12 {offsets = [0, 56], sizes = [16, 8], strides = [1, 1]} : vector<16x64xbf16> to vector<16x8xbf16>
    %87 = vector.shape_cast %86 : vector<16x8xbf16> to vector<1x16x8xbf16>
    %c0_33 = arith.constant 0 : index
    %c3 = arith.constant 3 : index
    %c0_34 = arith.constant 0 : index
    %c0_35 = arith.constant 0 : index
    %88 = vector.load %arg4[%c0_33, %c3, %c0_34, %c0_35] : memref<1x4x8x16xbf16, #tpu.memory_space<vmem>>, vector<1x1x8x16xbf16>
    %89 = vector.shape_cast %88 : vector<1x1x8x16xbf16> to vector<1x8x16xbf16>
    %90 = arith.extf %89 : vector<1x8x16xbf16> to vector<1x8x16xf32>
    "tpu.trace_start"() <{level = 10 : i32, message = "bnd,bkd->bnk"}> : () -> ()
    %cst_36 = arith.constant dense<0.000000e+00> : vector<1x8x16xf32>
    %91 = tpu.matmul %83, %85, %cst_36 {dimension_numbers = #tpu.dot_dimension_numbers<[2], [2], [1], [1], [0, 0, 0, 1, 1, 1], [0], [0]>} : vector<1x8x8xbf16>, vector<1x16x8xbf16>, vector<1x8x16xf32> -> vector<1x8x16xf32>
    "tpu.trace_stop"() : () -> ()
    %92 = arith.addf %91, %90 : vector<1x8x16xf32>
    %cst_37 = arith.constant dense<0xFF800000> : vector<1x8xf32>
    %93 = vector.multi_reduction <maximumf>, %92, %cst_37 [2] : vector<1x8x16xf32> to vector<1x8xf32>
    %94 = vector.shape_cast %93 : vector<1x8xf32> to vector<1x8x1xf32>
    %95 = vector.broadcast %94 : vector<1x8x1xf32> to vector<1x8x16xf32>
    %96 = arith.subf %92, %95 : vector<1x8x16xf32>
    %97 = math.exp %96 : vector<1x8x16xf32>
    %cst_38 = arith.constant dense<0.000000e+00> : vector<1x8xf32>
    %98 = vector.multi_reduction <add>, %97, %cst_38 [2] : vector<1x8x16xf32> to vector<1x8xf32>
    %99 = vector.shape_cast %98 : vector<1x8xf32> to vector<1x8x1xf32>
    %100 = tpu.reciprocal %99 {approx = true} : vector<1x8x1xf32> -> vector<1x8x1xf32>
    %101 = vector.broadcast %100 : vector<1x8x1xf32> to vector<1x8x16xf32>
    %102 = arith.mulf %97, %101 : vector<1x8x16xf32>
    %103 = arith.truncf %102 : vector<1x8x16xf32> to vector<1x8x16xbf16>
    "tpu.trace_start"() <{level = 10 : i32, message = "bnk,bkd->bnd"}> : () -> ()
    %cst_39 = arith.constant dense<0.000000e+00> : vector<1x8x8xf32>
    %104 = tpu.matmul %103, %87, %cst_39 {dimension_numbers = #tpu.dot_dimension_numbers<[2], [1], [1], [2], [0, 0, 0, 1, 1, 2], [0], [0]>} : vector<1x8x16xbf16>, vector<1x16x8xbf16>, vector<1x8x8xf32> -> vector<1x8x8xf32>
    "tpu.trace_stop"() : () -> ()
    %105 = tpu.concatenate %35, %58, %81, %104 in 2 : vector<1x8x8xf32>, vector<1x8x8xf32>, vector<1x8x8xf32>, vector<1x8x8xf32> -> vector<1x8x32xf32>
    %106 = vector.shape_cast %105 : vector<1x8x32xf32> to vector<8x32xf32>
    %107 = arith.truncf %106 : vector<8x32xf32> to vector<8x32xbf16>
    %108 = arith.index_cast %arg1 : i32 to index
    %c0_40 = arith.constant 0 : index
    %c0_41 = arith.constant 0 : index
    %109 = vector.load %arg14[%108, %c0_40, %c0_41] : memref<1x8x32xbf16, #tpu.memory_space<vmem>>, vector<1x8x32xbf16>
    %110 = vector.shape_cast %109 : vector<1x8x32xbf16> to vector<8x32xbf16>
    %111 = vector.shape_cast %107 : vector<8x32xbf16> to vector<1x8x32xbf16>
    tpu.vector_store %arg14[%108, %c0_40, %c0_41], %111 {strides = array<i32>} : memref<1x8x32xbf16, #tpu.memory_space<vmem>>, vector<1x8x32xbf16>,
    %c0_i32_42 = arith.constant 0 : i32
    %112 = arith.cmpi eq, %arg1, %c0_i32_42 : i32
    %113 = arith.extui %112 : i1 to i32
    %c0_i32_43 = arith.constant 0 : i32
    %114 = arith.cmpi ne, %113, %c0_i32_43 : i32
    scf.if %114 {
      %c0_44 = arith.constant 0 : index
      %c0_45 = arith.constant 0 : index
      %115 = vector.load %arg10[%c0_44, %c0_45] : memref<1x32xf32, #tpu.memory_space<vmem>>, vector<1x32xf32>
      %c0_46 = arith.constant 0 : index
      %c0_47 = arith.constant 0 : index
      %c0_48 = arith.constant 0 : index
      %116 = vector.load %arg14[%c0_46, %c0_47, %c0_48] : memref<1x8x32xbf16, #tpu.memory_space<vmem>>, vector<1x8x32xbf16>
      %117 = vector.shape_cast %116 : vector<1x8x32xbf16> to vector<8x32xbf16>
      %c0_49 = arith.constant 0 : index
      %c0_50 = arith.constant 0 : index
      %c0_51 = arith.constant 0 : index
      %118 = vector.load %arg9[%c0_49, %c0_50, %c0_51] : memref<1x32x32xbf16, #tpu.memory_space<vmem>>, vector<1x32x32xbf16>
      %119 = vector.shape_cast %118 : vector<1x32x32xbf16> to vector<32x32xbf16>
      %cst_52 = arith.constant dense<0.000000e+00> : vector<8x32xf32>
      %120 = tpu.matmul %117, %119, %cst_52 {dimension_numbers = #tpu.dot_dimension_numbers<[1], [0], [0], [1], [0, 0, 1, 1], [], []>} : vector<8x32xbf16>, vector<32x32xbf16>, vector<8x32xf32> -> vector<8x32xf32>
      %121 = vector.broadcast %115 : vector<1x32xf32> to vector<8x32xf32>
      %122 = arith.addf %121, %120 : vector<8x32xf32>
      %c0_53 = arith.constant 0 : index
      %c0_54 = arith.constant 0 : index
      %c0_55 = arith.constant 0 : index
      %123 = vector.load %arg2[%c0_53, %c0_54, %c0_55] : memref<1x8x32xf32, #tpu.memory_space<vmem>>, vector<1x8x32xf32>
      %124 = vector.shape_cast %122 : vector<8x32xf32> to vector<1x8x32xf32>
      %125 = arith.addf %123, %124 : vector<1x8x32xf32>
      %c0_56 = arith.constant 0 : index
      %c0_57 = arith.constant 0 : index
      %c0_58 = arith.constant 0 : index
      %126 = vector.load %arg11[%c0_56, %c0_57, %c0_58] : memref<1x8x32xf32, #tpu.memory_space<vmem>>, vector<1x8x32xf32>
      tpu.vector_store %arg11[%c0_56, %c0_57, %c0_58], %125 {strides = array<i32>} : memref<1x8x32xf32, #tpu.memory_space<vmem>>, vector<1x8x32xf32>,
    } else {
    }
    return
  }
  func.func @transform_0(%arg0: i32, %arg1: i32) -> (i32, i32, i32) {
    %c0_i32 = arith.constant 0 : i32
    %c0_i32_0 = arith.constant 0 : i32
    %c0_i32_1 = arith.constant 0 : i32
    return %arg0, %c0_i32, %c0_i32_0 : i32, i32, i32
  }
  func.func @transform_1(%arg0: i32, %arg1: i32) -> (i32, i32, i32) {
    %c0_i32 = arith.constant 0 : i32
    %c0_i32_0 = arith.constant 0 : i32
    %c0_i32_1 = arith.constant 0 : i32
    return %arg0, %c0_i32, %c0_i32_0 : i32, i32, i32
  }
  func.func @transform_2(%arg0: i32, %arg1: i32) -> (i32, i32, i32, i32) {
    %c0_i32 = arith.constant 0 : i32
    %c0_i32_0 = arith.constant 0 : i32
    %c0_i32_1 = arith.constant 0 : i32
    return %arg0, %arg1, %c0_i32, %c0_i32_0 : i32, i32, i32, i32
  }
  func.func @transform_3(%arg0: i32, %arg1: i32) -> (i32, i32) {
    %c0_i32 = arith.constant 0 : i32
    %c0_i32_0 = arith.constant 0 : i32
    %c0_i32_1 = arith.constant 0 : i32
    return %c0_i32, %c0_i32_0 : i32, i32
  }
  func.func @transform_4(%arg0: i32, %arg1: i32) -> (i32, i32) {
    %c0_i32 = arith.constant 0 : i32
    %c0_i32_0 = arith.constant 0 : i32
    %c0_i32_1 = arith.constant 0 : i32
    return %c0_i32, %c0_i32_0 : i32, i32
  }
  func.func @transform_5(%arg0: i32, %arg1: i32) -> (i32, i32, i32) {
    %c0_i32 = arith.constant 0 : i32
    %c0_i32_0 = arith.constant 0 : i32
    %c0_i32_1 = arith.constant 0 : i32
    return %arg1, %c0_i32, %c0_i32_0 : i32, i32, i32
  }
  func.func @transform_6(%arg0: i32, %arg1: i32) -> (i32, i32, i32) {
    %c0_i32 = arith.constant 0 : i32
    %c0_i32_0 = arith.constant 0 : i32
    %c0_i32_1 = arith.constant 0 : i32
    return %arg1, %c0_i32, %c0_i32_0 : i32, i32, i32
  }
  func.func @transform_7(%arg0: i32, %arg1: i32) -> (i32, i32, i32) {
    %c0_i32 = arith.constant 0 : i32
    %c0_i32_0 = arith.constant 0 : i32
    %c0_i32_1 = arith.constant 0 : i32
    %c0_i32_2 = arith.constant 0 : i32
    return %c0_i32, %c0_i32_0, %c0_i32_1 : i32, i32, i32
  }
  func.func @transform_8(%arg0: i32, %arg1: i32) -> (i32, i32) {
    %c0_i32 = arith.constant 0 : i32
    %c0_i32_0 = arith.constant 0 : i32
    %c0_i32_1 = arith.constant 0 : i32
    return %c0_i32, %c0_i32_0 : i32, i32
  }
  func.func @transform_9(%arg0: i32, %arg1: i32) -> (i32, i32, i32) {
    %c0_i32 = arith.constant 0 : i32
    %c0_i32_0 = arith.constant 0 : i32
    %c0_i32_1 = arith.constant 0 : i32
    return %arg0, %c0_i32, %c0_i32_0 : i32, i32, i32
  }
}

</mosaic_0001>

<bundles_post_ra>
// kernel: tpu_custom_call.1
= control target key start
LH: loop header
LB: loop body
LE: loop exit
PB: predicated region body
PF: predicated region fallthrough
CT: control target
= control target key end

     0   :  { %s2463_s0 = inlined_call_operand.hbm [shape: f32[2,8,32], index: 0, kind: input, shape index: {}]   ;;  %s2464_s1 = inlined_call_operand.hbm [shape: bf16[2,16,32], index: 1, kind: input, shape index: {}]   ;;  %s2465_s2 = inlined_call_operand.hbm [shape: bf16[2,4,8,16], index: 2, kind: input, shape index: {}]   ;;  %s2466_s3 = inlined_call_operand.vmem [shape: f32[1,32], index: 3, kind: input, shape index: {}]   ;;  %s2467_s4 = inlined_call_operand.vmem [shape: f32[1,32], index: 4, kind: input, shape index: {}]   ;;  %s2468_s5 = inlined_call_operand.vmem [shape: bf16[1,32,32], index: 5, kind: input, shape index: {}]   ;;  %s2469_s6 = inlined_call_operand.hbm [shape: bf16[1,32,64], index: 6, kind: input, shape index: {}]   ;;  %s2470_s7 = inlined_call_operand.hbm [shape: bf16[1,32,32], index: 7, kind: input, shape index: {}]   ;;  %s2471_s8 = inlined_call_operand.vmem [shape: f32[1,32], index: 8, kind: input, shape index: {}]   ;;  %s2472_s9 = inlined_call_operand.hbm [shape: f32[2,8,32], index: 9, kind: output, shape index: {}]  }
   0x1   :  { %2495 = sst [smem:[#allocation23_spill]] %s2463_s0 }
   0x2   :  { %2496 = sst [smem:[#allocation24_spill]] %s2464_s1 }
   0x3   :  { %2497 = sst [smem:[#allocation25_spill]] %s2467_s4 }
   0x4   :  { %2498 = sst [smem:[#allocation26_spill]] %s2469_s6 }
   0x5   :  { %2499 = sst [smem:[#allocation27_spill]] %s2470_s7 }
   0x6   :  { %2500 = sst [smem:[#allocation28_spill]] %s2471_s8 }
   0x7   :  { %2501 = sst [smem:[#allocation29_spill]] %s2472_s9 }
   0x8   :  { %14 = vsyncpa [#allocation6], 0 }
   0x9   :  { %16 = vsyncpa [#allocation6 + $0x1], 0 }
   0xa   :  { %17 = vsyncpa [#allocation9], 0 }
   0xb   :  { %19 = vsyncpa [#allocation9 + $0x1], 0 }
   0xc   :  { %20 = vsyncpa [#allocation12], 0 }
   0xd   :  { %21 = vsyncpa [#allocation7], 0 }
   0xe   :  { %23 = vsyncpa [#allocation7 + $0x1], 0  ;;  %s2008_s30 = smov 0   ;;  %s2010_s10 = smov 0  }
   0xf   :  { %s2012_s11 = smov 0   ;;  %s2014_s12 = smov 0  }
  0x10   :  { %s2016_s13 = smov 0   ;;  %s2018_s14 = smov 0  }
  0x11 LB: > { %2502 = sst [smem:[#allocation19_spill]] %s1916_s30  ;;  %s2039_s15 = sadd.s32 4294967295, %s1936_s14   ;;  %s1936_s14 = sphi %s2018_s14, %s29_s14   ;;  %s1932_s13 = sphi %s2016_s13, %s2549_s13   ;;  %s1928_s12 = sphi %s2014_s12, %s2548_s12   ;;  %s1924_s11 = sphi %s2012_s11, %s2547_s11   ;;  %s1920_s10 = sphi %s2010_s10, %s2546_s10   ;;  %s1916_s30 = sphi %s2008_s30, %s2545_s30  }
  0x12   : > { %2503 = sst [smem:[#allocation20_spill]] %s1928_s12  ;;  %s1414_s16 = sadd.s32 4294967294, %s1936_s14  }
  0x13   : > { %p55_p0 = scmp.ne.s32.totalorder %s1924_s11, %s1920_s10  ;;  %p56_p1 = scmp.eq.s32.totalorder %s1936_s14, 0 }
  0x14   : > { %p61_p2 = scmp.ne.s32.totalorder %s1920_s10, %s1916_s30  ;;  %p2476_p3 = scmp.eq.s32.totalorder %s2039_s15, 0 }
  0x15   : > { %p275_p4 = scmp.eq.s32.totalorder %s2039_s15, 1  ;;  %p2050_p5 = por %p56_p1, %p55_p0 }
  0x16   : > { %p281_p6 = scmp.eq.s32.totalorder %s1414_s16, 1  ;;  %p2056_p7 = por %p2476_p3, %p61_p2 }
  0x17   : > { %p2060_p8 = por %p275_p4, %p55_p0  ;;  %p1415_p10 = scmp.ge.s32.totalorder %s1936_s14, 1 }
  0x18   : > { %s2505_s19 = scalar_select %p2056_p7, 1, 0 }
  0x19   : > { %s2506_s20 = scalar_select %p2060_p8, 1, 0 }
  0x1a   : > { %p2064_p9 = por %p281_p6, %p61_p2  ;;  %p288_p11 = scmp.lt.s32.totalorder %s1936_s14, 3 }
  0x1b   : > { %2507 = sst [smem:[#allocation21_spill]] %s2506_s20  ;;  %s1938_s23 = smov [#allocation11]  }
  0x1c   : > { %s2508_s21 = scalar_select %p2064_p9, 1, 0 }
  0x1d   : > { %p2070_p12 = pnand %p1415_p10, %p288_p11  ;;  %s317_s24 = sshll.u32 %s1938_s23, 4  ;;  %s2074_s24 = int_to_ptr.vmem [resolvable:$true] %s317_s24 }
  0x1e   : > { %2509 = sst [smem:[#allocation22_spill]] %s2508_s21  ;;  %s41_s26 = sadd.s32 1, %s1932_s13 }
  0x1f   : > { %s2510_s22 = scalar_select %p2070_p12, 1, 0 }
  0x20   : > { %p1581_p13 = pneg %p2070_p12  ;;  %s2088_s27 = sand.u32 1, %s1924_s11  }
  0x21   : > { %p2090_p4 = scmp.ge.s32.totalorder %s41_s26, 2  ;;  %s2513_s6 = sld [smem:[#allocation26_spill]] }
  0x22   : > { %p2082_p2 = pnand %p1581_p13, %p2476_p3 }
  0x24   : > { %s2511_s25 = scalar_select %p2082_p2, 1, 0 }
  0x25   : > { %p2488_p10 = pneg %p2082_p2 }
  0x27   : > { %s1700_s23 = scalar_lea.hbm %s2513_s6, 256 }
  0x28   : > { %p1701_p6 = scmp.ne.s32.totalorder %s2513_s6, %s1700_s23  ;;  %p1707_p0 = scmp.lt.u32.totalorder %s1700_s23, %s2513_s6 }
  0x2a   : > { %p1703_p11 = pnand %p2488_p10, %p1701_p6 }
  0x2c   : > { %p1704_p13 = pneg %p1703_p11 }
  0x2e   : > { %p1709_p3 = pnand %p1707_p0, %p1704_p13 }
  0x30   : > { %1712 = shalt.err (!%p1709_p3)
}
  0x31   : > { %s1713_s29 = scalar_lea.vmem %s2074_s24, 256  ;;  %p1721_p7 = scmp.lt.s32.totalorder %s2074_s24, %s2074_s24 }
  0x32   : > { %p1714_p1 = scmp.ne.s32.totalorder %s2074_s24, %s1713_s29  ;;  %p1722_p6 = scmp.lt.s32.totalorder %s1713_s29, %s1713_s29 }
  0x34   : > { %p1716_p9 = pnand %p1714_p1, %p2488_p10  ;;  %p1723_p11 = por %p1722_p6, %p1721_p7 }
  0x36   : > { %p1717_p8 = pneg %p1716_p9 }
  0x38   : > { %p1724_p12 = pnand %p1723_p11, %p1717_p8 }
  0x3a   : > { %1727 = shalt.err (!%p1724_p12)
}
  0x3b   : > { %s2482_s9 = smov 64   ;;  %s2484_s30 = smov 4  }
  0x3c   : > { %1584 = dma.hbm_to_vmem [thread:$0]  (!%p2082_p2), %s2513_s6, 256, %s2074_s24, [#allocation12], %s2482_s9, %s2482_s9, %s2484_s30  }
  0x3d   : > { %s2551_s26 = smov (%p2090_p4, %s41_s26), 0  ;;  %s2486_s16 = sshll.u32 %s2088_s27, 3 }
  0x3e   : > { %s2487_s23 = sshll.u32 %s1932_s13, 7  ;;  %s45_s29 = ssub.s32 %s1932_s13, %s2551_s26 }
  0x3f   : > { %p2514_p3 = scmp.lt.s32.totalorder %s1936_s14, 2  ;;  %p46_p8 = scmp.eq.s32.totalorder %s45_s29, 0 }
  0x40   : > { %s365_s8 = sand.u32 1, %s1936_s14   ;;  %s2516_s12 = sadd.s32 1, %s1924_s11 }
  0x41   : > { %p2136_p7 = pnand %p2514_p3, %p2050_p5  ;;  %s2517_s1 = sld [smem:[#allocation24_spill]] }
  0x42   : > { %s2144_s4 = scalar_select %p46_p8, %s1924_s11, %s2516_s12  }
  0x43   : > { %s2515_s20 = scalar_select %p2136_p7, 1, 0 }
  0x44   : > { %s369_s18 = scalar_lea.vmem [#allocation8], %s2486_s16  ;;  %s1941_s29 = smov [#allocation13]  }
  0x45   : > { %s376_s21 = sshll.u32 %s369_s18, 4  ;;  %s2157_s9 = sshll.u32 %s1941_s29, 4  ;;  %s2155_s21 = int_to_ptr.vmem [resolvable:$true] %s376_s21  ;;  %s331_s9 = int_to_ptr.vmem [resolvable:$true] %s2157_s9 }
  0x46   : > { %s2159_s12 = scalar_lea.sflag [#allocation9], %s365_s8  ;;  %p2165_p9 = pneg %p2136_p7 }
  0x47   : > { %s2151_s17 = scalar_lea.hbm %s2517_s1, %s2487_s23  ;;  %s1733_s16 = scalar_lea.hbm %s2517_s1, 256 }
  0x48   : > { %s1728_s30 = scalar_lea.hbm %s2151_s17, 128  ;;  %p1734_p1 = scmp.lt.u32.totalorder %s2151_s17, %s2517_s1 }
  0x49   : > { %p1729_p5 = scmp.ne.s32.totalorder %s2151_s17, %s1728_s30  ;;  %p1735_p4 = scmp.lt.u32.totalorder %s1733_s16, %s1728_s30 }
  0x4a   : > { %s2518_s24 = scalar_select %p2165_p9, 1, 0 }
  0x4b   : > { %p1731_p12 = pnand %p2165_p9, %p1729_p5  ;;  %p1736_p13 = por %p1735_p4, %p1734_p1 }
  0x4c   : > { %p1737_p6 = scmp.lt.u32.totalorder %s1728_s30, %s2151_s17 }
  0x4d   : > { %p1732_p0 = pneg %p1731_p12 }
  0x4e   : > { %p1738_p11 = por %p1737_p6, %p1736_p13 }
  0x50   : > { %p1739_p3 = pnand %p1738_p11, %p1732_p0 }
  0x52   : > { %1742 = shalt.err (!%p1739_p3)
}
  0x53   : > { %s1743_s8 = scalar_lea.vmem %s2155_s21, 128  ;;  %s1942_s28 = smov [#allocation8]  }
  0x54   : > { %p1744_p8 = scmp.ne.s32.totalorder %s2155_s21, %s1743_s8  ;;  %s1748_s18 = sshll.u32 %s1942_s28, 4  ;;  %s1749_s18 = int_to_ptr.vmem [resolvable:$false] %s1748_s18 }
  0x55   : > { %s1750_s23 = scalar_lea.vmem %s1749_s18, 256  ;;  %p1751_p10 = scmp.lt.s32.totalorder %s2155_s21, %s1749_s18 }
  0x56   : > { %p1746_p5 = pnand %p1744_p8, %p2165_p9  ;;  %p1752_p2 = scmp.lt.s32.totalorder %s1750_s23, %s1743_s8 }
  0x58   : > { %p1747_p12 = pneg %p1746_p5  ;;  %p1753_p1 = por %p1752_p2, %p1751_p10 }
  0x5a   : > { %p1754_p4 = pnand %p1753_p1, %p1747_p12 }
  0x5c   : > { %1757 = shalt.err (!%p1754_p4)
}
  0x5d   : > { %s2519_s30 = smov 4   ;;  %s2520_s16 = smov 64  }
  0x5e   : > { %1594 = dma.hbm_to_vmem [thread:$0]  (!%p2136_p7), %s2151_s17, 128, %s2155_s21, %s2159_s12, %s2520_s16, %s2520_s16, %s2519_s30  }
  0x5f   : > { %s2521_s7 = sld [smem:[#allocation27_spill]]  ;;  %p2522_p10 = scmp.ne.s32.totalorder %s2511_s25, 0 }
  0x61   : > { %p2523_p0 = pneg %p2522_p10 }
  0x65   : > { %s1758_s18 = scalar_lea.hbm %s2521_s7, 256 }
  0x66   : > { %p1759_p2 = scmp.ne.s32.totalorder %s2521_s7, %s1758_s18  ;;  %p1765_p11 = scmp.lt.u32.totalorder %s1758_s18, %s2521_s7 }
  0x68   : > { %p1761_p13 = pnand %p1759_p2, %p2523_p0 }
  0x6a   : > { %p1762_p6 = pneg %p1761_p13 }
  0x6c   : > { %p1767_p3 = pnand %p1765_p11, %p1762_p6 }
  0x6e   : > { %1770 = shalt.err (!%p1767_p3)
}
  0x6f   : > { %s1771_s17 = scalar_lea.vmem %s331_s9, 256  ;;  %p2524_p5 = pmov %p2523_p0 }
  0x70   : > { %p1772_p8 = scmp.ne.s32.totalorder %s331_s9, %s1771_s17  ;;  %p1779_p4 = scmp.lt.s32.totalorder %s331_s9, %s331_s9 }
  0x71   : > { %p1780_p7 = scmp.lt.s32.totalorder %s1771_s17, %s1771_s17 }
  0x72   : > { %p1774_p12 = pnand %p1772_p8, %p2524_p5 }
  0x73   : > { %p1781_p9 = por %p1780_p7, %p1779_p4 }
  0x74   : > { %p1775_p1 = pneg %p1774_p12 }
  0x76   : > { %p1782_p0 = pnand %p1781_p9, %p1775_p1 }
  0x78   : > { %1785 = shalt.err (!%p1782_p0)
}
  0x79   : > { %1587 = dma.hbm_to_vmem [thread:$0]  (!%p2522_p10), %s2521_s7, 256, %s331_s9, [#allocation12], %s2520_s16, %s2520_s16, %s2519_s30  }
  0x7a   : > { %s2525_s21 = sshll.u32 %s1932_s13, 7  ;;  %s2526_s0 = sld [smem:[#allocation23_spill]] }
  0x7b   : > { %s2527_s8 = sshll.u32 %s2088_s27, 3  ;;  %s348_s1 = scalar_lea.sflag [#allocation6], %s2088_s27 }
  0x7c   : > { %s351_s25 = scalar_lea.vmem [#allocation5], %s2527_s8  ;;  %p2528_p9 = scmp.ne.s32.totalorder %s2518_s24, 0 }
  0x7d   : > { %s358_s23 = sshll.u32 %s351_s25, 4  ;;  %s359_s23 = int_to_ptr.vmem [resolvable:$true] %s358_s23 }
  0x80   : > { %s2221_s18 = scalar_lea.hbm %s2526_s0, %s2525_s21  ;;  %s1791_s21 = scalar_lea.hbm %s2526_s0, 256 }
  0x81   : > { %s1786_s6 = scalar_lea.hbm %s2221_s18, 128  ;;  %p1792_p13 = scmp.lt.u32.totalorder %s2221_s18, %s2526_s0 }
  0x82   : > { %p1787_p7 = scmp.ne.s32.totalorder %s2221_s18, %s1786_s6  ;;  %p1793_p6 = scmp.lt.u32.totalorder %s1791_s21, %s1786_s6 }
  0x83   : > { %p1795_p3 = scmp.lt.u32.totalorder %s1786_s6, %s2221_s18 }
  0x84   : > { %p1789_p2 = pnand %p1787_p7, %p2528_p9  ;;  %p1794_p11 = por %p1793_p6, %p1792_p13 }
  0x86   : > { %p1790_p10 = pneg %p1789_p2  ;;  %p1796_p8 = por %p1795_p3, %p1794_p11 }
  0x88   : > { %p1797_p5 = pnand %p1796_p8, %p1790_p10 }
  0x8a   : > { %1800 = shalt.err (!%p1797_p5)
}
  0x8b   : > { %s1801_s8 = scalar_lea.vmem %s359_s23, 128  ;;  %s1943_s25 = smov [#allocation5]  }
  0x8c   : > { %p1802_p12 = scmp.ne.s32.totalorder %s359_s23, %s1801_s8  ;;  %s1806_s17 = sshll.u32 %s1943_s25, 4  ;;  %s1807_s17 = int_to_ptr.vmem [resolvable:$false] %s1806_s17 }
  0x8d   : > { %s1808_s7 = scalar_lea.vmem %s1807_s17, 256  ;;  %p1809_p0 = scmp.lt.s32.totalorder %s359_s23, %s1807_s17 }
  0x8e   : > { %p1804_p1 = pnand %p1802_p12, %p2528_p9  ;;  %p1810_p7 = scmp.lt.s32.totalorder %s1808_s7, %s1801_s8 }
  0x90   : > { %p1805_p4 = pneg %p1804_p1  ;;  %p1811_p2 = por %p1810_p7, %p1809_p0 }
  0x92   : > { %p1812_p6 = pnand %p1811_p2, %p1805_p4 }
  0x94   : > { %1815 = shalt.err (!%p1812_p6)
}
  0x95   : > { %p2529_p13 = scmp.ne.s32.totalorder %s2515_s20, 0  ;;  %s1463_s6 = sshll.u32 %s1932_s13, 8 }
  0x96   : > { %s2530_s9 = sshll.u32 %s2088_s27, 4  ;;  %s2250_s0 = scalar_lea.hbm %s2465_s2, %s1463_s6 }
  0x97   : > { %1591 = dma.hbm_to_vmem [thread:$0]  (!%p2529_p13), %s2221_s18, 128, %s359_s23, %s348_s1  }
  0x98   : > { %s390_s21 = scalar_lea.vmem [#allocation10], %s2530_s9  ;;  %s1816_s17 = scalar_lea.hbm %s2250_s0, 256 }
  0x99   : > { %s399_s29 = sshll.u32 %s390_s21, 4  ;;  %p1817_p10 = scmp.ne.s32.totalorder %s2250_s0, %s1816_s17  ;;  %s2252_s29 = int_to_ptr.vmem [resolvable:$true] %s399_s29 }
  0x9a   : > { %s1821_s23 = scalar_lea.hbm %s2465_s2, 512  ;;  %p1822_p8 = scmp.lt.u32.totalorder %s2250_s0, %s2465_s2 }
  0x9b   : > { %p1819_p11 = pnand %p1817_p10, %p2528_p9  ;;  %p1823_p5 = scmp.lt.u32.totalorder %s1821_s23, %s1816_s17 }
  0x9c   : > { %p1825_p1 = scmp.lt.u32.totalorder %s1816_s17, %s2250_s0 }
  0x9d   : > { %p1820_p3 = pneg %p1819_p11  ;;  %p1824_p12 = por %p1823_p5, %p1822_p8 }
  0x9f   : > { %p1826_p4 = por %p1825_p1, %p1824_p12 }
  0xa1   : > { %p1827_p0 = pnand %p1826_p4, %p1820_p3 }
  0xa3   : > { %1830 = shalt.err (!%p1827_p0)
}
  0xa4   : > { %s1831_s7 = scalar_lea.vmem %s2252_s29, 256  ;;  %s1944_s6 = smov [#allocation10]  }
  0xa5   : > { %p1832_p7 = scmp.ne.s32.totalorder %s2252_s29, %s1831_s7  ;;  %s1836_s9 = sshll.u32 %s1944_s6, 4  ;;  %s1837_s9 = int_to_ptr.vmem [resolvable:$false] %s1836_s9 }
  0xa6   : > { %s1838_s21 = scalar_lea.vmem %s1837_s9, 512  ;;  %p1839_p10 = scmp.lt.s32.totalorder %s2252_s29, %s1837_s9 }
  0xa7   : > { %p1834_p2 = pnand %p1832_p7, %p2528_p9  ;;  %p1840_p11 = scmp.lt.s32.totalorder %s1838_s21, %s1831_s7 }
  0xa9   : > { %p1835_p6 = pneg %p1834_p2  ;;  %p1841_p8 = por %p1840_p11, %p1839_p10 }
  0xab   : > { %p1842_p5 = pnand %p1841_p8, %p1835_p6 }
  0xad   : > { %1845 = shalt.err (!%p1842_p5)
}
  0xae   : > { %1597 = dma.hbm_to_vmem [thread:$0]  (!%p2529_p13), %s2250_s0, 256, %s2252_s29, %s2159_s12, %s2520_s16, %s2520_s16, %s2519_s30  }
  0xaf   : > { %p2531_p9 = scmp.ne.s32.totalorder %s2510_s22, 0 }
  0xb0   : > { %s2282_s24 = sand.u32 (!%p2531_p9), 1, %s1920_s10   ;;  %p2532_p3 = scmp.ne.s32.totalorder (!%p2531_p9), %s2505_s19, 0 }
  0xb1   : > { %411 = sbr.rel (%p2531_p9) target bundleno = 2015 (0x7df), region = 56  ;;  %s2285_s28 = sshll.u32 (!%p2531_p9), %s2282_s24, 3 }
  0xb2   : > { %s414_s20 = scalar_lea.sflag (!%p2531_p9), [#allocation6], %s2282_s24  ;;  %s417_s25 = scalar_lea.vmem (!%p2531_p9), [#allocation5], %s2285_s28 }
  0xb8   : > { %1899 = dma.done.wait (%p2532_p3), %s414_s20, 128  }
  0xb9   : > { %1901 = vsyncadd (%p2532_p3), %s414_s20, 4294967168  ;;  %s422_s0 = sand.u32 1, %s2039_s15   ;;  %s426_s12 = scalar_lea.vmem [#allocation8], %s2285_s28 }
  0xba   : > { %s423_s22 = scalar_lea.sflag [#allocation9], %s422_s0 }
  0xbb   : > { %1903 = dma.done.wait (%p2532_p3), %s423_s22, 384  }
  0xbc   : > { %1905 = vsyncadd (%p2532_p3), %s423_s22, 4294966912  ;;  %s1431_s30 = sshll.u32 %s2282_s24, 4  ;;  %p2533_p13 = scmp.eq.s32.totalorder %s2039_s15, 0 }
  0xbd   : > { %s2300_s16 = scalar_lea.vmem [#allocation10], %s1431_s30 }
  0xbe   : > { %1907 = dma.done.wait (%p2533_p13), [#allocation12], 512   ;;  %p2534_p12 = pmov %p2533_p13 }
  0xbf   : > { %vm507_vm0 = vcmask 261120   ;;  %v1465_v0 = vld [vmem:[%s426_s12] sm:$0xff]   ;;  %v2306_v1 = vld [vmem:[%s417_s25] sm:$0xff]  ;;  %v1945_v24 = vmov 0.0   ;;  %vm1946_vm1 = vmmov 0   ;;  %s2535_s8 = sld [smem:[#allocation25_spill]] }
  0xc0   : > { %1909 = vsyncadd (%p2534_p12), [#allocation12], 4294966784  ;;  %v1466_v2 = vunpack.c.l.bf16 %v1465_v0  ;;  %v1467_v3 = vunpack.c.h.bf16 %v1465_v0  ;;  %v508_v4 = vsel %vm507_vm0, %v2306_v1, 0.0  ;;  %v1672_v22 = vld [vmem:[%s2468_s5] sm:$0xff]   ;;  %v1673_v23 = vld [vmem:[#allocation11] sm:$0xff]   ;;  %1493 = vmatprep.subr.bf16.mxu0 %v1945_v24  ;;  %1501 = vmatprep.subr.bf16.mxu1 %v1945_v24  ;;  %vm537_vm2 = vcmask 257024  }
  0xc1   : > { %509 = vadd.xlane.f32.xlu1 %v508_v4  ;;  %1494 = vmatpush3.bf16.msra.mxu0 %v1672_v22  ;;  %v1674_v25 = vld [vmem:[%s2468_s5 + $0x8] sm:$0xff]   ;;  %v1675_v26 = vld [vmem:[#allocation11 + $0x8] sm:$0xff]   ;;  %v1435_v38 = vld [vmem:[%s2466_s3] ss:$0 sm:$0xff]  ;;  %vm701_vm3 = vcmask 64512   ;;  %s1947_s7 = smov 120  }
  0xc2   : > { %v543_v5 = vsel %vm507_vm0, %v1466_v2, 0.0  ;;  %v546_v6 = vsel %vm507_vm0, %v1467_v3, 0.0  ;;  %1502 = vmatpush3.bf16.msra.mxu1 %v1673_v23  ;;  %1495 = vmatprep.subr.bf16.mxu0 %v1945_v24  ;;  %s1948_s6 = smov 112   ;;  %s1949_s9 = smov 104   ;;  %vm748_vm4 = vcmask 130048   ;;  %vm1156_vm5 = vcmask 195584  }
  0xc3   : > { %544 = vadd.xlane.f32.xlu0 %v543_v5  ;;  %1503 = vmatprep.subr.bf16.mxu1 %v1945_v24  ;;  %s1950_s21 = smov 88   ;;  %s1951_s20 = smov 80  }
  0xc4   : > { %1497 = vmatprep.mubr.msk.bf16.mxu0 %vm1946_vm1, %v1945_v24  ;;  %1505 = vmatprep.mubr.msk.bf16.mxu1 %vm1946_vm1, %v1945_v24  ;;  %s1952_s25 = smov 96   ;;  %s1953_s0 = smov 72  }
  0xc5   : > { %1496 = vmatpush3.bf16.msra.mxu0 %v1674_v25  ;;  %v1436_v43 = vld [vmem:[%s2535_s8] ss:$0 sm:$0xff]  ;;  %v1448_v25 = vld [vmem:[%s2300_s16 + $0x8] sm:$0xff]   ;;  %s1954_s22 = smov 8   ;;  %s1955_s12 = smov 16  }
  0xc6   : > { %1504 = vmatpush3.bf16.msra.mxu1 %v1675_v26  ;;  %1509 = vmatprep.subr.bf16.mxu0 %v1945_v24  ;;  %s1956_s30 = smov 24   ;;  %s2537_s29 = sld [smem:[#allocation28_spill]] }
  0xc7   : > { %547 = vadd.xlane.f32.xlu0 %v546_v6  ;;  %1515 = vmatprep.subr.bf16.mxu1 %v1945_v24  ;;  %s2538_s17 = sld [smem:[#allocation21_spill]]  ;;  %s492_s27 = scalar_lea.vmem [#allocation14], %s2285_s28 }
  0xc8   : > { %s1251_s23 = sshll.u32 %s492_s27, 4  ;;  %s1238_s28 = scalar_lea.sflag [#allocation7], %s2282_s24  ;;  %s2415_s23 = int_to_ptr.vmem [resolvable:$true] %s1251_s23 }
  0xcd   : > { %p2540_p4 = scmp.ne.s32.totalorder %s2538_s17, 0 }
 0x14e   : > { %v510_v7 = vpop.xlane.xlu1 %509 }
 0x14f   : > { %v512_v8 = vmul.f32 0.03125, %v510_v7 }
 0x150   : > { %v545_v9 = vpop.xlane.xlu0 %544 }
 0x151   : > { %v549_v10 = vmul.f32 0.03125, %v545_v9  ;;  %v513_v11 = vsub.f32 %v2306_v1, %v512_v8 }
 0x153   : > { %v551_v12 = vsub.f32 %v1466_v2, %v549_v10  ;;  %v514_v16 = vmul.f32 %v513_v11, %v513_v11 }
 0x154   : > { %v548_v13 = vpop.xlane.xlu0 %547 }
 0x155   : > { %v550_v14 = vmul.f32 0.03125, %v548_v13  ;;  %v553_v15 = vmul.f32 %v551_v12, %v551_v12  ;;  %v515_v20 = vsel %vm507_vm0, %v514_v16, 0.0 }
 0x157   : > { %v552_v17 = vsub.f32 %v1467_v3, %v550_v14  ;;  %v555_v18 = vsel %vm507_vm0, %v553_v15, 0.0 }
 0x158   : > { %556 = vadd.xlane.f32.xlu1 %v555_v18 }
 0x159   : > { %v554_v19 = vmul.f32 %v552_v17, %v552_v17 }
 0x15b   : > { %v558_v21 = vsel %vm507_vm0, %v554_v19, 0.0 }
 0x15c   : > { %559 = vadd.xlane.f32.xlu0 %v558_v21  ;;  %516 = vadd.xlane.f32.xlu1 %v515_v20 }
 0x1e5   : > { %v557_v27 = vpop.xlane.xlu1 %556 }
 0x1e6   : > { %v561_v28 = vmul.f32 0.03125, %v557_v27 }
 0x1e8   : > { %v563_v29 = vadd.f32 1e-05, %v561_v28  ;;  %v922_v28 = vunpack.c.l.bf16 %v1448_v25 }
 0x1e9   : > { %v560_v30 = vpop.xlane.xlu0 %559  ;;  %v517_v31 = vpop.xlane.xlu1 %516 }
 0x1ea   : > { %1678 = vrsqrt.f32 %v563_v29  ;;  %v562_v32 = vmul.f32 0.03125, %v560_v30  ;;  %v518_v33 = vmul.f32 0.03125, %v517_v31 }
 0x1ec   : > { %v564_v34 = vadd.f32 1e-05, %v562_v32  ;;  %v519_v35 = vadd.f32 1e-05, %v518_v33 }
 0x1ee   : > { %1680 = vrsqrt.f32 %v564_v34 }
 0x1ef   : > { %1682 = vrsqrt.f32 %v519_v35  ;;  %v1033_v35 = vunpack.c.h.bf16 %v1448_v25 }
 0x1f4   : > { %v1679_v36 = vpop.eup %1678 }
 0x1f5   : > { %v567_v37 = vmul.f32 %v1679_v36, %v551_v12 }
 0x1f7   : > { %v569_v41 = vmul.f32 %v1435_v38, %v567_v37 }
 0x1f8   : > { %v1681_v39 = vpop.eup %1680 }
 0x1f9   : > { %v1683_v40 = vpop.eup %1682  ;;  %v568_v42 = vmul.f32 %v1681_v39, %v552_v17  ;;  %v571_v47 = vadd.f32 %v1436_v43, %v569_v41 }
 0x1fa   : > { %v521_v44 = vmul.f32 %v1683_v40, %v513_v11  ;;  %v699_v11 = vld [vmem:[%s2300_s16] sm:$0xff]   ;;  %s2536_s16 = sld [smem:[#allocation20_spill]] }
 0x1fb   : > { %v570_v45 = vmul.f32 %v1435_v38, %v568_v42  ;;  %v700_v12 = vunpack.c.l.bf16 %v699_v11  ;;  %v810_v19 = vunpack.c.h.bf16 %v699_v11 }
 0x1fc   : > { %v528_v46 = vmul.f32 %v1435_v38, %v521_v44 }
 0x1fd   : > { %v572_v48 = vadd.f32 %v1436_v43, %v570_v45 }
 0x1fe   : > { %v535_v49 = vadd.f32 %v1436_v43, %v528_v46 }
 0x1ff   : > { %v573_v50 = vpack.c.bf16 %v572_v48, %v571_v47 }
 0x200   : > { %v536_v51 = vpack.c.bf16 %v535_v49, %v535_v49  ;;  %s1459_s18 = sshll.u32 %s2536_s16, 7 }
 0x201   : > { %574 = vst.msk [vmem:[#allocation3] sm:$0xff] %vm507_vm0, %v573_v50 }
 0x202   : > { %538 = vst.msk [vmem:[#allocation2] sm:$0xf] %vm537_vm2, %v536_v51 }
 0x208   : > { %v576_v52 = vld [vmem:[#allocation3] sm:$0xff] }
 0x209   : > { %v575_v53 = vld [vmem:[#allocation2] sm:$0xf]  ;;  %1506 = vmatmul.mubr.msk.bf16.vlgmr.msra.gmra.mrb[0].mxu1 %vm507_vm0, %v576_v52 }
 0x20a   : > { %1498 = vmatmul.mubr.msk.bf16.vlgmr.msra.gmra.mrb[0].mxu0 %vm507_vm0, %v575_v53  ;;  %1517 = vmatprep.mubr.msk.bf16.mxu1 %vm1946_vm1, %v1945_v24 }
 0x20b   : > { %1511 = vmatprep.mubr.msk.bf16.mxu0 %vm1946_vm1, %v1945_v24 }
 0x2dc   : > { %v691_v54 = vpop.f32.mrb[0].mxu1 }
 0x2dd   : > { %v631_v55 = vpop.f32.mrb[0].mxu0  ;;  %v1507_v56 = vpop.f32.mrb[1].mxu1 }
 0x2de   : > { %v637_v57 = vpack.c.bf16 %v631_v55, %v631_v55  ;;  %v1499_v58 = vpop.f32.mrb[1].mxu0  ;;  %v694_v59 = vpop.f32.mrb[2].mxu1 }
 0x2df   : > { %v634_v60 = vpop.f32.mrb[2].mxu0  ;;  %v2346_v61 = vpack.c.bf16 %v694_v59, %v691_v54  ;;  %v1508_v62 = vpop.f32.mrb[3].mxu1 }
 0x2e0   : > { %812 = vrot.lane.b32.xlu1 %v637_v57, %s1947_s7  ;;  %v1500_v63 = vpop.f32.mrb[3].mxu0 }
 0x2e1   : > { %814 = vrot.lane.b32.xlu0 %v2346_v61, %s1947_s7  ;;  %v706_v0 = vsel %vm701_vm3, %v2346_v61, 0  ;;  %s2539_s7 = sld [smem:[#allocation29_spill]] }
 0x2e2   : > { %1510 = vmatpush3.bf16.xpose.msra.mxu0 %v706_v0 }
 0x2e3   : > { %1521 = vmatprep.subr.bf16.mxu0 %v1945_v24 }
 0x2e4   : > { %925 = vrot.lane.b32.xlu1 %v2346_v61, %s1948_s6 }
 0x2e5   : > { %1036 = vrot.lane.b32.xlu0 %v2346_v61, %s1949_s9 }
 0x2e8   : > { %923 = vrot.lane.b32.xlu1 %v637_v57, %s1948_s6  ;;  %s2413_s6 = scalar_lea.hbm %s2539_s7, %s1459_s18 }
 0x2e9   : > { %1512 = vmatmul.mubr.msk.bf16.vlgmr.msra.gmra.mrb[4].mxu0 %vm701_vm3, %v637_v57 }
 0x2ea   : > { %1523 = vmatprep.mubr.msk.bf16.mxu0 %vm1946_vm1, %v1945_v24 }
 0x2ec   : > { %1034 = vrot.lane.b32.xlu1 %v637_v57, %s1949_s9  ;;  %s1846_s9 = scalar_lea.vmem %s2415_s23, 128 }
 0x2ed   : > { %p1847_p1 = scmp.ne.s32.totalorder %s2415_s23, %s1846_s9 }
 0x2ef   : > { %p1848_p0 = pnand %p1847_p1, %p2540_p4 }
 0x2f1   : > { %p1849_p7 = pneg %p1848_p0 }
 0x352   : > { %v813_v2 = vpop.permute.xlu1 %812 }
 0x353   : > { %v815_v3 = vpop.permute.xlu0 %814 }
 0x354   : > { %v820_v4 = vsel %vm701_vm3, %v815_v3, 0 }
 0x355   : > { %1522 = vmatpush3.bf16.xpose.msra.mxu0 %v820_v4 }
 0x356   : > { %1533 = vmatprep.subr.bf16.mxu0 %v1945_v24  ;;  %v926_v5 = vpop.permute.xlu1 %925 }
 0x357   : > { %v931_v6 = vsel %vm701_vm3, %v926_v5, 0  ;;  %v1037_v7 = vpop.permute.xlu0 %1036 }
 0x358   : > { %v1042_v9 = vsel %vm701_vm3, %v1037_v7, 0 }
 0x35a   : > { %v924_v8 = vpop.permute.xlu1 %923 }
 0x35c   : > { %1524 = vmatmul.mubr.msk.bf16.vlgmr.msra.gmra.mrb[8].mxu0 %vm701_vm3, %v813_v2 }
 0x35d   : > { %1534 = vmatpush3.bf16.xpose.msra.mxu0 %v931_v6  ;;  %1535 = vmatprep.mubr.msk.bf16.mxu0 %vm1946_vm1, %v1945_v24 }
 0x35e   : > { %1545 = vmatprep.subr.bf16.mxu0 %v1945_v24  ;;  %v1035_v10 = vpop.permute.xlu1 %1034 }
 0x364   : > { %1536 = vmatmul.mubr.msk.bf16.vlgmr.msra.gmra.mrb[12].mxu0 %vm701_vm3, %v924_v8 }
 0x365   : > { %1546 = vmatpush3.bf16.xpose.msra.mxu0 %v1042_v9  ;;  %1547 = vmatprep.mubr.msk.bf16.mxu0 %vm1946_vm1, %v1945_v24 }
 0x366   : > { %1557 = vmatprep.subr.bf16.mxu0 %v1945_v24 }
 0x36c   : > { %1548 = vmatmul.mubr.msk.bf16.vlgmr.msra.gmra.mrb[16].mxu0 %vm701_vm3, %v1035_v10 }
 0x36d   : > { %1561 = vmatprep.mubr.msk.bf16.mxu0 %vm1946_vm1, %v1945_v24 }
 0x3bc   : > { %v742_v13 = vpop.f32.mrb[4].mxu0 }
 0x3bd   : > { %v743_v14 = vadd.f32 %v742_v13, %v700_v12  ;;  %v1513_v15 = vpop.f32.mrb[5].mxu0 }
 0x3be   : > { %v745_v16 = vpop.f32.mrb[6].mxu0 }
 0x3bf   : > { %v1514_v17 = vpop.f32.mrb[7].mxu0  ;;  %v749_v18 = vsel %vm748_vm4, %v743_v14, -inf }
 0x3c0   : > { %750 = vmax.xlane.f32.xlu0 %v749_v18 }
 0x42f   : > { %v856_v20 = vpop.f32.mrb[8].mxu0 }
 0x430   : > { %v857_v21 = vadd.f32 %v856_v20, %v810_v19  ;;  %v1525_v22 = vpop.f32.mrb[9].mxu0 }
 0x431   : > { %v859_v23 = vpop.f32.mrb[10].mxu0 }
 0x432   : > { %v1526_v26 = vpop.f32.mrb[11].mxu0  ;;  %v862_v27 = vsel %vm748_vm4, %v857_v21, -inf }
 0x433   : > { %863 = vmax.xlane.f32.xlu1 %v862_v27 }
 0x437   : > { %v967_v29 = vpop.f32.mrb[12].mxu0 }
 0x438   : > { %v968_v30 = vadd.f32 %v967_v29, %v922_v28  ;;  %v1537_v31 = vpop.f32.mrb[13].mxu0 }
 0x439   : > { %v970_v32 = vpop.f32.mrb[14].mxu0 }
 0x43a   : > { %v1538_v33 = vpop.f32.mrb[15].mxu0  ;;  %v973_v34 = vsel %vm748_vm4, %v968_v30, -inf  ;;  %v1676_v32 = vld [vmem:[#allocation13] sm:$0xff]  }
 0x43b   : > { %974 = vmax.xlane.f32.xlu0 %v973_v34  ;;  %1558 = vmatpush3.bf16.msra.mxu0 %v1676_v32  ;;  %v1677_v33 = vld [vmem:[#allocation13 + $0x8] sm:$0xff]  }
 0x43c   : > { %1559 = vmatprep.subr.bf16.mxu0 %v1945_v24 }
 0x43f   : > { %v1078_v36 = vpop.f32.mrb[16].mxu0  ;;  %1560 = vmatpush3.bf16.msra.mxu0 %v1677_v33 }
 0x440   : > { %v1079_v37 = vadd.f32 %v1078_v36, %v1033_v35  ;;  %v1549_v38 = vpop.f32.mrb[17].mxu0 }
 0x441   : > { %v1081_v39 = vpop.f32.mrb[18].mxu0 }
 0x442   : > { %v1550_v40 = vpop.f32.mrb[19].mxu0  ;;  %v1084_v41 = vsel %vm748_vm4, %v1079_v37, -inf }
 0x443   : > { %1085 = vmax.xlane.f32.xlu0 %v1084_v41 }
 0x44d   : > { %v751_v42 = vpop.xlane.xlu0 %750 }
 0x44e   : > { %v752_v43 = vsub.f32 %v743_v14, %v751_v42 }
 0x450   : > { %v753_v44 = vmul.f32 1.442695, %v752_v43 }
 0x452   : > { %1684 = vpow2.f32 %v753_v44 }
 0x45c   : > { %v1685_v45 = vpop.eup %1684 }
 0x45d   : > { %v755_v46 = vsel %vm748_vm4, %v1685_v45, 0.0 }
 0x45e   : > { %756 = vadd.xlane.f32.xlu0 %v755_v46 }
 0x4c0   : > { %v864_v47 = vpop.xlane.xlu1 %863 }
 0x4c1   : > { %v865_v48 = vsub.f32 %v857_v21, %v864_v47 }
 0x4c3   : > { %v866_v49 = vmul.f32 1.442695, %v865_v48 }
 0x4c5   : > { %1686 = vpow2.f32 %v866_v49 }
 0x4c8   : > { %v975_v50 = vpop.xlane.xlu0 %974 }
 0x4c9   : > { %v976_v51 = vsub.f32 %v968_v30, %v975_v50 }
 0x4cb   : > { %v977_v52 = vmul.f32 1.442695, %v976_v51 }
 0x4cd   : > { %1688 = vpow2.f32 %v977_v52 }
 0x4cf   : > { %v1687_v53 = vpop.eup %1686 }
 0x4d0   : > { %v868_v54 = vsel %vm748_vm4, %v1687_v53, 0.0  ;;  %v1086_v57 = vpop.xlane.xlu0 %1085 }
 0x4d1   : > { %869 = vadd.xlane.f32.xlu1 %v868_v54  ;;  %v1087_v58 = vsub.f32 %v1079_v37, %v1086_v57 }
 0x4d3   : > { %v1088_v59 = vmul.f32 1.442695, %v1087_v58 }
 0x4d5   : > { %1690 = vpow2.f32 %v1088_v59 }
 0x4d7   : > { %v1689_v55 = vpop.eup %1688 }
 0x4d8   : > { %v979_v56 = vsel %vm748_vm4, %v1689_v55, 0.0 }
 0x4d9   : > { %980 = vadd.xlane.f32.xlu0 %v979_v56 }
 0x4df   : > { %v1691_v60 = vpop.eup %1690 }
 0x4e0   : > { %v1090_v62 = vsel %vm748_vm4, %v1691_v60, 0.0 }
 0x4e2   : > { %874 = vrot.lane.b32.xlu1 %v2346_v61, %s1950_s21  ;;  %s1957_s21 = smov [#allocation14]  }
 0x4e6   : > { %985 = vrot.lane.b32.xlu1 %v2346_v61, %s1951_s20  ;;  %s1850_s20 = sshll.u32 %s1957_s21, 4  ;;  %s1851_s20 = int_to_ptr.vmem [resolvable:$false] %s1850_s20 }
 0x4e7   : > { %p1853_p2 = scmp.lt.s32.totalorder %s2415_s23, %s1851_s20 }
 0x4eb   : > { %v757_v63 = vpop.xlane.xlu0 %756 }
 0x4ec   : > { %1692 = vrcp.f32 %v757_v63 }
 0x4ef   : > { %762 = vrot.lane.b32.xlu0 %v2346_v61, %s1952_s25  ;;  %s1852_s25 = scalar_lea.vmem %s1851_s20, 256 }
 0x4f0   : > { %p1854_p6 = scmp.lt.s32.totalorder %s1852_s25, %s1846_s9 }
 0x4f2   : > { %p1855_p10 = por %p1854_p6, %p1853_p2 }
 0x4f4   : > { %p1856_p11 = pnand %p1855_p10, %p1849_p7 }
 0x4f6   : > { %v1693_v2 = vpop.eup %1692 }
 0x4f7   : > { %v759_v4 = vmul.f32 %v1693_v2, %v1685_v45  ;;  %v1457_v45 = vld [vmem:[%s2537_s29] ss:$0 sm:$0xff] }
 0x4f9   : > { %v760_v6 = vpack.c.bf16 %v759_v4, %v759_v4 }
 0x50a   : > { %1091 = vadd.xlane.f32.xlu1 %v1090_v62 }
 0x51b   : > { %1096 = vrot.lane.b32.xlu1 %v2346_v61, %s1953_s0 }
 0x55e   : > { %v870_v0 = vpop.xlane.xlu1 %869 }
 0x55f   : > { %1694 = vrcp.f32 %v870_v0 }
 0x562   : > { %v875_v8 = vpop.permute.xlu1 %874 }
 0x566   : > { %v981_v3 = vpop.xlane.xlu0 %980  ;;  %v986_v11 = vpop.permute.xlu1 %985 }
 0x567   : > { %1696 = vrcp.f32 %v981_v3 }
 0x569   : > { %v1695_v7 = vpop.eup %1694 }
 0x56a   : > { %v763_v5 = vpop.permute.xlu0 %762  ;;  %v872_v61 = vmul.f32 %v1695_v7, %v1687_v53 }
 0x56b   : > { %1516 = vmatpush3.bf16.msra.mxu1 %v763_v5 }
 0x56c   : > { %1527 = vmatprep.subr.bf16.mxu1 %v1945_v24  ;;  %v873_v9 = vpack.c.bf16 %v872_v61, %v872_v61 }
 0x56e   : > { %1518 = vmatmul.mubr.msk.bf16.vlgmr.msra.gmra.mrb[4].mxu1 %vm748_vm4, %v760_v6 }
 0x56f   : > { %1528 = vmatpush3.bf16.msra.mxu1 %v875_v8  ;;  %1529 = vmatprep.mubr.msk.bf16.mxu1 %vm1946_vm1, %v1945_v24 }
 0x570   : > { %1539 = vmatprep.subr.bf16.mxu1 %v1945_v24 }
 0x571   : > { %v1697_v10 = vpop.eup %1696 }
 0x572   : > { %v983_v12 = vmul.f32 %v1697_v10, %v1689_v55 }
 0x574   : > { %v984_v13 = vpack.c.bf16 %v983_v12, %v983_v12 }
 0x576   : > { %1530 = vmatmul.mubr.msk.bf16.vlgmr.msra.gmra.mrb[8].mxu1 %vm748_vm4, %v873_v9 }
 0x577   : > { %1540 = vmatpush3.bf16.msra.mxu1 %v986_v11  ;;  %1541 = vmatprep.mubr.msk.bf16.mxu1 %vm1946_vm1, %v1945_v24 }
 0x578   : > { %1551 = vmatprep.subr.bf16.mxu1 %v1945_v24 }
 0x57e   : > { %1542 = vmatmul.mubr.msk.bf16.vlgmr.msra.gmra.mrb[12].mxu1 %vm748_vm4, %v984_v13 }
 0x57f   : > { %1553 = vmatprep.mubr.msk.bf16.mxu1 %vm1946_vm1, %v1945_v24 }
 0x597   : > { %v1092_v14 = vpop.xlane.xlu1 %1091 }
 0x598   : > { %1698 = vrcp.f32 %v1092_v14 }
 0x59b   : > { %v1097_v15 = vpop.permute.xlu1 %1096 }
 0x59c   : > { %1552 = vmatpush3.bf16.msra.mxu1 %v1097_v15 }
 0x5a2   : > { %v1699_v16 = vpop.eup %1698 }
 0x5a3   : > { %v1094_v17 = vmul.f32 %v1699_v16, %v1691_v60 }
 0x5a5   : > { %v1095_v18 = vpack.c.bf16 %v1094_v17, %v1094_v17 }
 0x5a7   : > { %1554 = vmatmul.mubr.msk.bf16.vlgmr.msra.gmra.mrb[16].mxu1 %vm748_vm4, %v1095_v18 }
 0x641   : > { %v802_v19 = vpop.f32.mrb[4].mxu1 }
 0x642   : > { %v1519_v20 = vpop.f32.mrb[5].mxu1 }
 0x643   : > { %v805_v21 = vpop.f32.mrb[6].mxu1 }
 0x644   : > { %v1520_v22 = vpop.f32.mrb[7].mxu1 }
 0x649   : > { %v914_v23 = vpop.f32.mrb[8].mxu1 }
 0x64a   : > { %1143 = vrot.lane.b32.xlu0 %v914_v23, %s1954_s22  ;;  %v1531_v25 = vpop.f32.mrb[9].mxu1 }
 0x64b   : > { %v917_v26 = vpop.f32.mrb[10].mxu1 }
 0x64c   : > { %v1532_v27 = vpop.f32.mrb[11].mxu1 }
 0x651   : > { %v1025_v28 = vpop.f32.mrb[12].mxu1 }
 0x652   : > { %1147 = vrot.lane.b32.xlu1 %v1025_v28, %s1955_s12  ;;  %v1543_v29 = vpop.f32.mrb[13].mxu1 }
 0x653   : > { %v1028_v30 = vpop.f32.mrb[14].mxu1 }
 0x654   : > { %v1544_v31 = vpop.f32.mrb[15].mxu1 }
 0x67a   : > { %v1136_v34 = vpop.f32.mrb[16].mxu1 }
 0x67b   : > { %1151 = vrot.lane.b32.xlu0 %v1136_v34, %s1956_s30  ;;  %v1555_v35 = vpop.f32.mrb[17].mxu1 }
 0x67c   : > { %v1139_v36 = vpop.f32.mrb[18].mxu1 }
 0x67d   : > { %v1556_v37 = vpop.f32.mrb[19].mxu1 }
 0x6bc   : > { %v1144_v38 = vpop.permute.xlu0 %1143 }
 0x6bd   : > { %v1154_v40 = vsel %vm701_vm3, %v802_v19, %v1144_v38 }
 0x6c4   : > { %v1148_v39 = vpop.permute.xlu1 %1147 }
 0x6c5   : > { %v1155_v41 = vsel %vm748_vm4, %v1154_v40, %v1148_v39 }
 0x6ed   : > { %v1152_v42 = vpop.permute.xlu0 %1151 }
 0x6ee   : > { %v1157_v43 = vsel %vm1156_vm5, %v1155_v41, %v1152_v42 }
 0x6ef   : > { %v1158_v44 = vpack.c.bf16 %v1157_v43, %v1157_v43 }
 0x6f1   : > { %1162 = vst.msk [vmem:[#allocation4] sm:$0xf] %vm537_vm2, %v1158_v44 }
 0x6f8   : > { %v1167_v24 = vld [vmem:[#allocation4] sm:$0xf] }
 0x6f9   : > { %1562 = vmatmul.mubr.msk.bf16.vlgmr.msra.gmra.mrb[20].mxu0 %vm507_vm0, %v1167_v24 }
 0x7cc   : > { %v1221_v46 = vpop.f32.mrb[20].mxu0 }
 0x7cd   : > { %v1233_v47 = vadd.f32 %v1457_v45, %v1221_v46  ;;  %v1563_v48 = vpop.f32.mrb[21].mxu0 }
 0x7ce   : > { %v1224_v49 = vpop.f32.mrb[22].mxu0 }
 0x7cf   : > { %v1235_v50 = vadd.f32 %v1233_v47, %v2306_v1  ;;  %v1564_v51 = vpop.f32.mrb[23].mxu0 }
 0x7d1   : > { %1236 = vst.msk [vmem:[%s492_s27] sm:$0xff] %vm507_vm0, %v1235_v50 }
 0x7d2   : > { %1859 = shalt.err (!%p1856_p11)
}
 0x7d3   : > { %s1860_s24 = scalar_lea.hbm %s2413_s6, 128  ;;  %s1864_s12 = scalar_lea.hbm %s2539_s7, 256 }
 0x7d4   : > { %p1861_p8 = scmp.ne.s32.totalorder %s2413_s6, %s1860_s24  ;;  %p1865_p3 = scmp.lt.u32.totalorder %s2413_s6, %s2539_s7 }
 0x7d5   : > { %p1866_p13 = scmp.lt.u32.totalorder %s1864_s12, %s1860_s24  ;;  %p1868_p1 = scmp.lt.u32.totalorder %s1860_s24, %s2413_s6 }
 0x7d6   : > { %p1862_p5 = pnand %p1861_p8, %p2540_p4 }
 0x7d7   : > { %p1867_p12 = por %p1866_p13, %p1865_p3 }
 0x7d8   : > { %p1863_p9 = pneg %p1862_p5 }
 0x7d9   : > { %p1869_p0 = por %p1868_p1, %p1867_p12 }
 0x7db   : > { %p1870_p7 = pnand %p1869_p0, %p1863_p9 }
 0x7dd   : > { %1873 = shalt.err (!%p1870_p7)
}
 0x7de   : > { %1579 = dma.vmem_to_hbm [thread:$0]  (%p2540_p4), %s2415_s23, 128, %s2413_s6, %s1238_s28  }
 0x7df PF: > { %s2541_s15 = sld [smem:[#allocation19_spill]]  ;;  %s2542_s19 = sld [smem:[#allocation22_spill]] }
 0x7e0   : > { %p2544_p6 = scmp.ge.s32.totalorder %s1936_s14, 2 }
 0x7e5   : > { %s1263_s29 = sand.u32 1, %s2541_s15   ;;  %p2543_p2 = scmp.ne.s32.totalorder %s2542_s19, 0 }
 0x7e6   : > { %s1264_s18 = scalar_lea.sflag [#allocation7], %s1263_s29 }
 0x7e7   : > { %p1599_p10 = pnand %p2544_p6, %p2543_p2 }
 0x7e9   : > { %1911 = dma.done.wait (!%p1599_p10), %s1264_s18, 128  }
 0x7ea   : > { %1913 = vsyncadd (!%p1599_p10), %s1264_s18, 4294967168  ;;  %s29_s14 = sadd.s32 1, %s1936_s14   ;;  %s2545_s30 = smov %s1920_s10 }
 0x7eb   : > { %p26_p11 = scmp.ge.s32.totalorder %s29_s14, 4   ;;  %s2546_s10 = smov %s1924_s11 }
 0x7ec   : > { %s2547_s11 = smov %s2144_s4  ;;  %s2548_s12 = smov %s1932_s13 }
 0x7ed   : > { %s2549_s13 = smov %s2551_s26  ;;  %28 = sbr.rel (!%p26_p11) target bundleno = 17 (0x11), region = 149 }
 0x7f4   :  { %1269 = vsyncpa [#allocation6], 1 }
 0x7f5   :  { %1271 = vsyncpa [#allocation6 + $0x1], 1 }
 0x7f6   :  { %1272 = vsyncpa [#allocation9], 1 }
 0x7f7   :  { %1274 = vsyncpa [#allocation9 + $0x1], 1 }
 0x7f8   :  { %1275 = vsyncpa [#allocation12], 1 }
 0x7f9   :  { %1276 = vsyncpa [#allocation7], 1 }
 0x7fa   :  { %1278 = vsyncpa [#allocation7 + $0x1], 1 }

</bundles_post_ra>
